<compile_context>
chip_gen: v7x
topology: tpu7x:2x2x1
jax: 0.10.0
libtpu: 0.0.40
codegen_flags: <defaults>
</compile_context>

<pallas_src>
import functools

import jax
import jax.numpy as jnp
from jax.experimental import pallas as pl
from jax.experimental.pallas import tpu as pltpu

EPS = 1e-5


def _cdiv(a, b):
    return (a + b - 1) // b


# ----------------------------------------------------------------------------
# Fused BasicBlock kernel: conv1+bn1+relu -> (VMEM scratch) -> conv2+bn2+relu
# ----------------------------------------------------------------------------
def _basic_block_kernel(x_ref, w1_ref, b1_ref, w2_ref, b2_ref, o_ref, mid_ref,
                        *, stride, Ho, Wo, Hph):
    """One image per grid step.

    x_ref  : (s*s*Hph, Wph, Cin) bf16  zero-padded, phase-split input
    w1_ref : (9, Cin, C1)        bf16  BN1-folded conv1 weight, tap-major
    b1_ref : (1, C1)             f32   BN1-folded bias
    w2_ref : (9, C1, C2)         bf16  BN2-folded conv2 weight, tap-major
    b2_ref : (1, C2)             f32   BN2-folded bias
    o_ref  : (Ho, Wo, C2)        bf16  block output
    mid_ref: (Ho+2, Wo+2, C1)    bf16  VMEM scratch: padded intermediate
    """
    s = stride
    cin = w1_ref.shape[1]
    c1 = w1_ref.shape[2]
    c2 = w2_ref.shape[2]

    # ---- conv1 + bn1 + relu: 9 shifted MXU matmuls, f32 accumulation -------
    acc1 = jnp.zeros((Ho * Wo, c1), jnp.float32)
    for dy in range(3):
        for dx in range(3):
            p = (dy % s) * s + (dx % s)        # which spatial phase of x
            r0 = p * Hph + dy // s             # static row offset in x_ref
            c0 = dx // s                       # static col offset in phase
            tap = x_ref[pl.ds(r0, Ho), pl.ds(c0, Wo), :]           # (Ho,Wo,Cin)
            acc1 = acc1 + jnp.dot(tap.reshape(Ho * Wo, cin),
                                  w1_ref[dy * 3 + dx],
                                  preferred_element_type=jnp.float32)
    y1 = jnp.maximum(acc1 + b1_ref[...], 0.0)

    # ---- stage intermediate in VMEM, zero-padded by 1 for the next 3x3 -----
    mid_ref[...] = jnp.zeros(mid_ref.shape, mid_ref.dtype)
    mid_ref[pl.ds(1, Ho), pl.ds(1, Wo), :] = (
        y1.reshape(Ho, Wo, c1).astype(mid_ref.dtype))

    # ---- conv2 + bn2 + relu (stride 1, unit-stride taps on the scratch) ----
    acc2 = jnp.zeros((Ho * Wo, c2), jnp.float32)
    for dy in range(3):
        for dx in range(3):
            tap = mid_ref[pl.ds(dy, Ho), pl.ds(dx, Wo), :]         # (Ho,Wo,C1)
            acc2 = acc2 + jnp.dot(tap.reshape(Ho * Wo, c1),
                                  w2_ref[dy * 3 + dx],
                                  preferred_element_type=jnp.float32)
    y2 = jnp.maximum(acc2 + b2_ref[...], 0.0)
    o_ref[...] = y2.reshape(Ho, Wo, c2).astype(o_ref.dtype)


# ----------------------------------------------------------------------------
# Host-side prep: zero-pad by 1 and split into stride*stride spatial phases so
# the kernel never needs strided loads.  (~2 HBM passes over x; im2col was 9x+.)
# ----------------------------------------------------------------------------
def _phase_pack(x_nhwc, stride):
    """(N,H,W,C) -> (N, s*s*Hph, Wph, C) bf16.  Phase (py,px) = padded_x[py::s, px::s]
    lives at rows [(py*s+px)*Hph, (py*s+px+1)*Hph)."""
    n, h, w, c = x_nhwc.shape
    s = stride
    xp = jnp.pad(x_nhwc, ((0, 0), (1, 1), (1, 1), (0, 0)))
    hph, wph = _cdiv(h + 2, s), _cdiv(w + 2, s)
    phases = []
    for py in range(s):
        for px in range(s):
            ph = xp[:, py::s, px::s, :]
            pad_h, pad_w = hph - ph.shape[1], wph - ph.shape[2]
            if pad_h or pad_w:
                ph = jnp.pad(ph, ((0, 0), (0, pad_h), (0, pad_w), (0, 0)))
            phases.append(ph)
    packed = phases[0] if len(phases) == 1 else jnp.concatenate(phases, axis=1)
    return packed.astype(jnp.bfloat16), hph, wph


# ----------------------------------------------------------------------------
# Forward wrappers
# ----------------------------------------------------------------------------
def basic_block_forward_nhwc(params, x_nhwc, *, stride):
    """Fused Pallas BasicBlock forward on NHWC input -> (N, Ho, Wo, planes) bf16.

    NOTE: the reference forward assigns `residual = x` but never adds it and
    ignores `downsample` / `plain`, so there is no residual path here either.
    """
    n, h, w, cin = x_nhwc.shape
    s = stride
    ho = (h + 2 - 3) // s + 1
    wo = (w + 2 - 3) // s + 1
    # In-kernel (Ho,Wo,C) <-> (Ho*Wo,C) reshapes are layout-preserving when Wo
    # is sublane-aligned; keep the demo shapes there.
    assert wo % 8 == 0, "TODO(synk): support Wo not a multiple of 8"

    w1, b1, w2, b2 = params["w1"], params["b1"], params["w2"], params["b2"]
    assert w1.shape[1] == cin, (w1.shape, cin)
    c1, c2 = int(w1.shape[2]), int(w2.shape[2])

    xph, hph, wph = _phase_pack(x_nhwc, s)
    s2 = s * s

    # VMEM budget computed from the actual buffers (double-buffered pipeline
    # operands + scratch) rather than a hard-coded number (v7x: 64 MiB/TC).
    x_blk = s2 * hph * wph * cin * 2
    o_blk = ho * wo * c2 * 2
    w_bytes = (w1.size + w2.size) * 2 + (b1.size + b2.size) * 4
    mid_bytes = (ho + 2) * (wo + 2) * c1 * 2
    vmem_limit = int(min(max(2 * (x_blk + o_blk + w_bytes) + mid_bytes + (8 << 20),
                             16 << 20), 64 << 20))

    kernel = functools.partial(_basic_block_kernel,
                               stride=s, Ho=ho, Wo=wo, Hph=hph)
    return pl.pallas_call(
        kernel,
        out_shape=jax.ShapeDtypeStruct((n, ho, wo, c2), jnp.bfloat16),
        grid=(n,),
        in_specs=[
            pl.BlockSpec((None, s2 * hph, wph, cin), lambda b: (b, 0, 0, 0)),
            pl.BlockSpec((9, cin, c1), lambda b: (0, 0, 0)),
            pl.BlockSpec((1, c1), lambda b: (0, 0)),
            pl.BlockSpec((9, c1, c2), lambda b: (0, 0, 0)),
            pl.BlockSpec((1, c2), lambda b: (0, 0)),
        ],
        out_specs=pl.BlockSpec((None, ho, wo, c2), lambda b: (b, 0, 0, 0)),
        scratch_shapes=[pltpu.VMEM((ho + 2, wo + 2, c1), jnp.bfloat16)],
        compiler_params=pltpu.CompilerParams(
            dimension_semantics=("parallel",),     # megacore shards images
            vmem_limit_bytes=vmem_limit,
        ),
    )(xph, w1, b1, w2, b2)


def basic_block_forward(params, x_nchw, *, stride):
    """PyTorch-layout (NCHW) convenience wrapper around the NHWC fused kernel."""
    x = jnp.transpose(x_nchw, (0, 2, 3, 1))
    out = basic_block_forward_nhwc(params, x, stride=stride)
    return jnp.transpose(out, (0, 3, 1, 2))


# ----------------------------------------------------------------------------
# Parameters: PyTorch-style raw params, then folded/tap-major kernel params.
# ----------------------------------------------------------------------------
def init_basic_block_raw_params(key, inplanes, planes):
    kc1, kc2, kb1, kb2 = jax.random.split(key, 4)

    def conv_w(k, cin, cout):
        std = (2.0 / (9 * cin)) ** 0.5
        return std * jax.random.normal(k, (cout, cin, 3, 3), jnp.float32)

    def bn(k, c):
        kg, kb, km, kv = jax.random.split(k, 4)
        return dict(
            g=1.0 + 0.1 * jax.random.normal(kg, (c,), jnp.float32),
            b=0.1 * jax.random.normal(kb, (c,), jnp.float32),
            m=0.1 * jax.random.normal(km, (c,), jnp.float32),
            v=0.9 + 0.2 * jax.random.uniform(kv, (c,), jnp.float32),
        )

    return dict(conv1_w=conv_w(kc1, inplanes, planes), bn1=bn(kb1, planes),
                conv2_w=conv_w(kc2, planes, planes), bn2=bn(kb2, planes))


def fold_basic_block_params(raw):
    """Fold eval-mode BN into conv weight/bias; lay weights out tap-major
    (9, Cin, Cout) in bf16.  No channel padding (block dims == array dims)."""
    def fold(w_oihw, bn):
        scale = bn["g"] * jax.lax.rsqrt(bn["v"] + EPS)
        bias = bn["b"] - bn["m"] * scale
        w = jnp.transpose(w_oihw, (2, 3, 1, 0)) * scale          # (3,3,Cin,Cout)
        w = w.reshape(9, w.shape[2], w.shape[3]).astype(jnp.bfloat16)
        return w, bias.reshape(1, -1).astype(jnp.float32)

    w1, b1 = fold(raw["conv1_w"], raw["bn1"])
    w2, b2 = fold(raw["conv2_w"], raw["bn2"])
    return dict(w1=w1, b1=b1, w2=w2, b2=b2)


# ----------------------------------------------------------------------------
# References
# ----------------------------------------------------------------------------
def basic_block_reference_f32(raw, x_nchw, stride):
    """Pure-JAX f32 reference mirroring the PyTorch BasicBlock.forward."""
    x = jnp.transpose(x_nchw, (0, 2, 3, 1)).astype(jnp.float32)

    def conv(x, w_oihw, s):
        return jax.lax.conv_general_dilated(
            x, jnp.transpose(w_oihw, (2, 3, 1, 0)), (s, s), ((1, 1), (1, 1)),
            dimension_numbers=("NHWC", "HWIO", "NHWC"),
            precision=jax.lax.Precision.HIGHEST)

    def bn(x, p):
        return (x - p["m"]) * p["g"] * jax.lax.rsqrt(p["v"] + EPS) + p["b"]

    out = jax.nn.relu(bn(conv(x, raw["conv1_w"], stride), raw["bn1"]))
    out = jax.nn.relu(bn(conv(out, raw["conv2_w"], 1), raw["bn2"]))
    return jnp.transpose(out, (0, 3, 1, 2))


def basic_block_reference_bf16(params, x_nchw, *, stride):
    """XLA reference using the same BN-folded bf16 weights and the same bf16
    activation quantization points as the kernel path (tight check)."""
    x = jnp.transpose(x_nchw, (0, 2, 3, 1)).astype(jnp.float32)

    def convq(x, w9, bias, s):
        cin, cout = w9.shape[1], w9.shape[2]
        w = w9.astype(jnp.float32).reshape(3, 3, cin, cout)
        xq = x.astype(jnp.bfloat16).astype(jnp.float32)
        y = jax.lax.conv_general_dilated(
            xq, w, (s, s), ((1, 1), (1, 1)),
            dimension_numbers=("NHWC", "HWIO", "NHWC"),
            precision=jax.lax.Precision.HIGHEST)
        return jax.nn.relu(y + bias)

    out = convq(x, params["w1"], params["b1"], stride)
    out = convq(out, params["w2"], params["b2"], 1)
    return jnp.transpose(out, (0, 3, 1, 2))


# ----------------------------------------------------------------------------
if __name__ == "__main__":
    key = jax.random.PRNGKey(0)
    kp, kx = jax.random.split(key)

    # --- Block 1: strided BasicBlock(16 -> 32, stride=2) --------------------
    inplanes, planes, stride = 16, 32, 2
    N, H, W = 2, 16, 16

    raw = init_basic_block_raw_params(kp, inplanes, planes)
    params = fold_basic_block_params(raw)
    x = jax.random.normal(kx, (N, inplanes, H, W), jnp.float32)  # NCHW, like PyTorch

    fwd = jax.jit(functools.partial(basic_block_forward, stride=stride))
    y = fwd(params, x)
    jax.block_until_ready(y)

    Ho, Wo = H // stride, W // stride
    assert y.shape == (N, planes, Ho, Wo), y.shape
    y32 = y.astype(jnp.float32)
    assert bool(jnp.all(jnp.isfinite(y32)))

    # Tight check: XLA conv with the identical BN-folded bf16 weights and the
    # same quantization points (validates taps, phases, fusion, layout).
    y_q = basic_block_reference_bf16(params, x, stride=stride)
    err_q = float(jnp.max(jnp.abs(y32 - y_q)))
    assert err_q < 6e-2, f"kernel vs bf16 reference mismatch: {err_q}"

    # Looser check: full-precision PyTorch-style reference (validates the BN
    # folding; slack covers bf16 quantization of activations/weights/output).
    y_f = basic_block_reference_f32(raw, x, stride)
    err_f = float(jnp.max(jnp.abs(y32 - y_f)))
    assert err_f < 1.5e-1, f"kernel vs f32 reference mismatch: {err_f}"

    # --- Block 2: stride-1 BasicBlock(32 -> 32) (single-phase path) ---------
    raw2 = init_basic_block_raw_params(jax.random.fold_in(kp, 1), planes, planes)
    params2 = fold_basic_block_params(raw2)
    x2 = jax.random.normal(jax.random.fold_in(kx, 1), (N, planes, H, W),
                           jnp.float32)

    fwd1 = jax.jit(functools.partial(basic_block_forward, stride=1))
    y2 = fwd1(params2, x2)
    jax.block_until_ready(y2)
    assert y2.shape == (N, planes, H, W), y2.shape
    y2_q = basic_block_reference_bf16(params2, x2, stride=1)
    err2 = float(jnp.max(jnp.abs(y2.astype(jnp.float32) - y2_q)))
    assert err2 < 6e-2, f"stride-1 kernel vs bf16 reference mismatch: {err2}"

    print("KERNEL_OK")
</pallas_src>

<mosaic_0001>
module attributes {stable_mosaic.version = 11 : i64} {
  func.func @_basic_block_kernel(%arg0: i32, %arg1: memref<1x36x9x16xbf16, #tpu.memory_space<vmem>>, %arg2: memref<9x16x32xbf16, #tpu.memory_space<vmem>>, %arg3: memref<1x32xf32, #tpu.memory_space<vmem>>, %arg4: memref<9x32x32xbf16, #tpu.memory_space<vmem>>, %arg5: memref<1x32xf32, #tpu.memory_space<vmem>>, %arg6: memref<1x8x8x32xbf16, #tpu.memory_space<vmem>>, %arg7: memref<10x10x32xbf16, #tpu.memory_space<vmem>>) attributes {dimension_semantics = [#tpu.dimension_semantics<parallel>], iteration_bounds = array<i64: 2>, scalar_prefetch = 0 : i64, scratch_operands = 1 : i64, tpu.core_type = #tpu.core_type<tc>, window_params = [{transform_indices = @transform_0, window_bounds = array<i64: 1, 36, 9, 16>}, {pipeline_mode = #tpu.pipeline_mode<synchronous>, transform_indices = @transform_1, window_bounds = array<i64: 9, 16, 32>}, {pipeline_mode = #tpu.pipeline_mode<synchronous>, transform_indices = @transform_2, window_bounds = array<i64: 1, 32>}, {pipeline_mode = #tpu.pipeline_mode<synchronous>, transform_indices = @transform_3, window_bounds = array<i64: 9, 32, 32>}, {pipeline_mode = #tpu.pipeline_mode<synchronous>, transform_indices = @transform_4, window_bounds = array<i64: 1, 32>}, {transform_indices = @transform_5, window_bounds = array<i64: 1, 8, 8, 32>}]} {
    %cst = arith.constant 0.000000e+00 : f32
    %0 = vector.broadcast %cst : f32 to vector<64x32xf32>
    %c0 = arith.constant 0 : index
    %c0_0 = arith.constant 0 : index
    %c0_1 = arith.constant 0 : index
    %c0_2 = arith.constant 0 : index
    %1 = vector.load %arg1[%c0, %c0_0, %c0_1, %c0_2] : memref<1x36x9x16xbf16, #tpu.memory_space<vmem>>, vector<1x8x8x16xbf16>
    %2 = vector.shape_cast %1 : vector<1x8x8x16xbf16> to vector<8x8x16xbf16>
    %3 = vector.shape_cast %2 : vector<8x8x16xbf16> to vector<64x16xbf16>
    %c0_3 = arith.constant 0 : index
    %c0_4 = arith.constant 0 : index
    %c0_5 = arith.constant 0 : index
    %4 = vector.load %arg2[%c0_3, %c0_4, %c0_5] : memref<9x16x32xbf16, #tpu.memory_space<vmem>>, vector<1x16x32xbf16>
    %5 = vector.shape_cast %4 : vector<1x16x32xbf16> to vector<16x32xbf16>
    %cst_6 = arith.constant dense<0.000000e+00> : vector<64x32xf32>
    %6 = tpu.matmul %3, %5, %cst_6 {dimension_numbers = #tpu.dot_dimension_numbers<[1], [0], [0], [1], [0, 0, 1, 1], [], []>} : vector<64x16xbf16>, vector<16x32xbf16>, vector<64x32xf32> -> vector<64x32xf32>
    %7 = arith.addf %0, %6 : vector<64x32xf32>
    %c0_7 = arith.constant 0 : index
    %c9 = arith.constant 9 : index
    %c0_8 = arith.constant 0 : index
    %c0_9 = arith.constant 0 : index
    %8 = vector.load %arg1[%c0_7, %c9, %c0_8, %c0_9] : memref<1x36x9x16xbf16, #tpu.memory_space<vmem>>, vector<1x8x8x16xbf16>
    %9 = vector.shape_cast %8 : vector<1x8x8x16xbf16> to vector<8x8x16xbf16>
    %10 = vector.shape_cast %9 : vector<8x8x16xbf16> to vector<64x16xbf16>
    %c1 = arith.constant 1 : index
    %c0_10 = arith.constant 0 : index
    %c0_11 = arith.constant 0 : index
    %11 = vector.load %arg2[%c1, %c0_10, %c0_11] : memref<9x16x32xbf16, #tpu.memory_space<vmem>>, vector<1x16x32xbf16>
    %12 = vector.shape_cast %11 : vector<1x16x32xbf16> to vector<16x32xbf16>
    %cst_12 = arith.constant dense<0.000000e+00> : vector<64x32xf32>
    %13 = tpu.matmul %10, %12, %cst_12 {dimension_numbers = #tpu.dot_dimension_numbers<[1], [0], [0], [1], [0, 0, 1, 1], [], []>} : vector<64x16xbf16>, vector<16x32xbf16>, vector<64x32xf32> -> vector<64x32xf32>
    %14 = arith.addf %7, %13 : vector<64x32xf32>
    %c0_13 = arith.constant 0 : index
    %c0_14 = arith.constant 0 : index
    %c1_15 = arith.constant 1 : index
    %c0_16 = arith.constant 0 : index
    %15 = vector.load %arg1[%c0_13, %c0_14, %c1_15, %c0_16] : memref<1x36x9x16xbf16, #tpu.memory_space<vmem>>, vector<1x8x8x16xbf16>
    %16 = vector.shape_cast %15 : vector<1x8x8x16xbf16> to vector<8x8x16xbf16>
    %17 = vector.shape_cast %16 : vector<8x8x16xbf16> to vector<64x16xbf16>
    %c2 = arith.constant 2 : index
    %c0_17 = arith.constant 0 : index
    %c0_18 = arith.constant 0 : index
    %18 = vector.load %arg2[%c2, %c0_17, %c0_18] : memref<9x16x32xbf16, #tpu.memory_space<vmem>>, vector<1x16x32xbf16>
    %19 = vector.shape_cast %18 : vector<1x16x32xbf16> to vector<16x32xbf16>
    %cst_19 = arith.constant dense<0.000000e+00> : vector<64x32xf32>
    %20 = tpu.matmul %17, %19, %cst_19 {dimension_numbers = #tpu.dot_dimension_numbers<[1], [0], [0], [1], [0, 0, 1, 1], [], []>} : vector<64x16xbf16>, vector<16x32xbf16>, vector<64x32xf32> -> vector<64x32xf32>
    %21 = arith.addf %14, %20 : vector<64x32xf32>
    %c0_20 = arith.constant 0 : index
    %c18 = arith.constant 18 : index
    %c0_21 = arith.constant 0 : index
    %c0_22 = arith.constant 0 : index
    %22 = vector.load %arg1[%c0_20, %c18, %c0_21, %c0_22] : memref<1x36x9x16xbf16, #tpu.memory_space<vmem>>, vector<1x8x8x16xbf16>
    %23 = vector.shape_cast %22 : vector<1x8x8x16xbf16> to vector<8x8x16xbf16>
    %24 = vector.shape_cast %23 : vector<8x8x16xbf16> to vector<64x16xbf16>
    %c3 = arith.constant 3 : index
    %c0_23 = arith.constant 0 : index
    %c0_24 = arith.constant 0 : index
    %25 = vector.load %arg2[%c3, %c0_23, %c0_24] : memref<9x16x32xbf16, #tpu.memory_space<vmem>>, vector<1x16x32xbf16>
    %26 = vector.shape_cast %25 : vector<1x16x32xbf16> to vector<16x32xbf16>
    %cst_25 = arith.constant dense<0.000000e+00> : vector<64x32xf32>
    %27 = tpu.matmul %24, %26, %cst_25 {dimension_numbers = #tpu.dot_dimension_numbers<[1], [0], [0], [1], [0, 0, 1, 1], [], []>} : vector<64x16xbf16>, vector<16x32xbf16>, vector<64x32xf32> -> vector<64x32xf32>
    %28 = arith.addf %21, %27 : vector<64x32xf32>
    %c0_26 = arith.constant 0 : index
    %c27 = arith.constant 27 : index
    %c0_27 = arith.constant 0 : index
    %c0_28 = arith.constant 0 : index
    %29 = vector.load %arg1[%c0_26, %c27, %c0_27, %c0_28] : memref<1x36x9x16xbf16, #tpu.memory_space<vmem>>, vector<1x8x8x16xbf16>
    %30 = vector.shape_cast %29 : vector<1x8x8x16xbf16> to vector<8x8x16xbf16>
    %31 = vector.shape_cast %30 : vector<8x8x16xbf16> to vector<64x16xbf16>
    %c4 = arith.constant 4 : index
    %c0_29 = arith.constant 0 : index
    %c0_30 = arith.constant 0 : index
    %32 = vector.load %arg2[%c4, %c0_29, %c0_30] : memref<9x16x32xbf16, #tpu.memory_space<vmem>>, vector<1x16x32xbf16>
    %33 = vector.shape_cast %32 : vector<1x16x32xbf16> to vector<16x32xbf16>
    %cst_31 = arith.constant dense<0.000000e+00> : vector<64x32xf32>
    %34 = tpu.matmul %31, %33, %cst_31 {dimension_numbers = #tpu.dot_dimension_numbers<[1], [0], [0], [1], [0, 0, 1, 1], [], []>} : vector<64x16xbf16>, vector<16x32xbf16>, vector<64x32xf32> -> vector<64x32xf32>
    %35 = arith.addf %28, %34 : vector<64x32xf32>
    %c0_32 = arith.constant 0 : index
    %c18_33 = arith.constant 18 : index
    %c1_34 = arith.constant 1 : index
    %c0_35 = arith.constant 0 : index
    %36 = vector.load %arg1[%c0_32, %c18_33, %c1_34, %c0_35] : memref<1x36x9x16xbf16, #tpu.memory_space<vmem>>, vector<1x8x8x16xbf16>
    %37 = vector.shape_cast %36 : vector<1x8x8x16xbf16> to vector<8x8x16xbf16>
    %38 = vector.shape_cast %37 : vector<8x8x16xbf16> to vector<64x16xbf16>
    %c5 = arith.constant 5 : index
    %c0_36 = arith.constant 0 : index
    %c0_37 = arith.constant 0 : index
    %39 = vector.load %arg2[%c5, %c0_36, %c0_37] : memref<9x16x32xbf16, #tpu.memory_space<vmem>>, vector<1x16x32xbf16>
    %40 = vector.shape_cast %39 : vector<1x16x32xbf16> to vector<16x32xbf16>
    %cst_38 = arith.constant dense<0.000000e+00> : vector<64x32xf32>
    %41 = tpu.matmul %38, %40, %cst_38 {dimension_numbers = #tpu.dot_dimension_numbers<[1], [0], [0], [1], [0, 0, 1, 1], [], []>} : vector<64x16xbf16>, vector<16x32xbf16>, vector<64x32xf32> -> vector<64x32xf32>
    %42 = arith.addf %35, %41 : vector<64x32xf32>
    %c0_39 = arith.constant 0 : index
    %c1_40 = arith.constant 1 : index
    %c0_41 = arith.constant 0 : index
    %c0_42 = arith.constant 0 : index
    %43 = vector.load %arg1[%c0_39, %c1_40, %c0_41, %c0_42] : memref<1x36x9x16xbf16, #tpu.memory_space<vmem>>, vector<1x8x8x16xbf16>
    %44 = vector.shape_cast %43 : vector<1x8x8x16xbf16> to vector<8x8x16xbf16>
    %45 = vector.shape_cast %44 : vector<8x8x16xbf16> to vector<64x16xbf16>
    %c6 = arith.constant 6 : index
    %c0_43 = arith.constant 0 : index
    %c0_44 = arith.constant 0 : index
    %46 = vector.load %arg2[%c6, %c0_43, %c0_44] : memref<9x16x32xbf16, #tpu.memory_space<vmem>>, vector<1x16x32xbf16>
    %47 = vector.shape_cast %46 : vector<1x16x32xbf16> to vector<16x32xbf16>
    %cst_45 = arith.constant dense<0.000000e+00> : vector<64x32xf32>
    %48 = tpu.matmul %45, %47, %cst_45 {dimension_numbers = #tpu.dot_dimension_numbers<[1], [0], [0], [1], [0, 0, 1, 1], [], []>} : vector<64x16xbf16>, vector<16x32xbf16>, vector<64x32xf32> -> vector<64x32xf32>
    %49 = arith.addf %42, %48 : vector<64x32xf32>
    %c0_46 = arith.constant 0 : index
    %c10 = arith.constant 10 : index
    %c0_47 = arith.constant 0 : index
    %c0_48 = arith.constant 0 : index
    %50 = vector.load %arg1[%c0_46, %c10, %c0_47, %c0_48] : memref<1x36x9x16xbf16, #tpu.memory_space<vmem>>, vector<1x8x8x16xbf16>
    %51 = vector.shape_cast %50 : vector<1x8x8x16xbf16> to vector<8x8x16xbf16>
    %52 = vector.shape_cast %51 : vector<8x8x16xbf16> to vector<64x16xbf16>
    %c7 = arith.constant 7 : index
    %c0_49 = arith.constant 0 : index
    %c0_50 = arith.constant 0 : index
    %53 = vector.load %arg2[%c7, %c0_49, %c0_50] : memref<9x16x32xbf16, #tpu.memory_space<vmem>>, vector<1x16x32xbf16>
    %54 = vector.shape_cast %53 : vector<1x16x32xbf16> to vector<16x32xbf16>
    %cst_51 = arith.constant dense<0.000000e+00> : vector<64x32xf32>
    %55 = tpu.matmul %52, %54, %cst_51 {dimension_numbers = #tpu.dot_dimension_numbers<[1], [0], [0], [1], [0, 0, 1, 1], [], []>} : vector<64x16xbf16>, vector<16x32xbf16>, vector<64x32xf32> -> vector<64x32xf32>
    %56 = arith.addf %49, %55 : vector<64x32xf32>
    %c0_52 = arith.constant 0 : index
    %c1_53 = arith.constant 1 : index
    %c1_54 = arith.constant 1 : index
    %c0_55 = arith.constant 0 : index
    %57 = vector.load %arg1[%c0_52, %c1_53, %c1_54, %c0_55] : memref<1x36x9x16xbf16, #tpu.memory_space<vmem>>, vector<1x8x8x16xbf16>
    %58 = vector.shape_cast %57 : vector<1x8x8x16xbf16> to vector<8x8x16xbf16>
    %59 = vector.shape_cast %58 : vector<8x8x16xbf16> to vector<64x16xbf16>
    %c8 = arith.constant 8 : index
    %c0_56 = arith.constant 0 : index
    %c0_57 = arith.constant 0 : index
    %60 = vector.load %arg2[%c8, %c0_56, %c0_57] : memref<9x16x32xbf16, #tpu.memory_space<vmem>>, vector<1x16x32xbf16>
    %61 = vector.shape_cast %60 : vector<1x16x32xbf16> to vector<16x32xbf16>
    %cst_58 = arith.constant dense<0.000000e+00> : vector<64x32xf32>
    %62 = tpu.matmul %59, %61, %cst_58 {dimension_numbers = #tpu.dot_dimension_numbers<[1], [0], [0], [1], [0, 0, 1, 1], [], []>} : vector<64x16xbf16>, vector<16x32xbf16>, vector<64x32xf32> -> vector<64x32xf32>
    %63 = arith.addf %56, %62 : vector<64x32xf32>
    %c0_59 = arith.constant 0 : index
    %c0_60 = arith.constant 0 : index
    %64 = vector.load %arg3[%c0_59, %c0_60] : memref<1x32xf32, #tpu.memory_space<vmem>>, vector<1x32xf32>
    %65 = vector.broadcast %64 : vector<1x32xf32> to vector<64x32xf32>
    %66 = arith.addf %63, %65 : vector<64x32xf32>
    %cst_61 = arith.constant 0.000000e+00 : f32
    %67 = vector.broadcast %cst_61 : f32 to vector<64x32xf32>
    %68 = arith.maximumf %66, %67 : vector<64x32xf32>
    %cst_62 = arith.constant 0.000000e+00 : bf16
    %69 = vector.broadcast %cst_62 : bf16 to vector<10x10x32xbf16>
    %c0_63 = arith.constant 0 : index
    %c0_64 = arith.constant 0 : index
    %c0_65 = arith.constant 0 : index
    %70 = vector.load %arg7[%c0_63, %c0_64, %c0_65] : memref<10x10x32xbf16, #tpu.memory_space<vmem>>, vector<10x10x32xbf16>
    tpu.vector_store %arg7[%c0_63, %c0_64, %c0_65], %69 {strides = array<i32>} : memref<10x10x32xbf16, #tpu.memory_space<vmem>>, vector<10x10x32xbf16>,
    %71 = vector.shape_cast %68 : vector<64x32xf32> to vector<8x8x32xf32>
    %72 = arith.truncf %71 : vector<8x8x32xf32> to vector<8x8x32xbf16>
    %c1_66 = arith.constant 1 : index
    %c1_67 = arith.constant 1 : index
    %c0_68 = arith.constant 0 : index
    %73 = vector.load %arg7[%c1_66, %c1_67, %c0_68] : memref<10x10x32xbf16, #tpu.memory_space<vmem>>, vector<8x8x32xbf16>
    tpu.vector_store %arg7[%c1_66, %c1_67, %c0_68], %72 {strides = array<i32>} : memref<10x10x32xbf16, #tpu.memory_space<vmem>>, vector<8x8x32xbf16>,
    %cst_69 = arith.constant 0.000000e+00 : f32
    %74 = vector.broadcast %cst_69 : f32 to vector<64x32xf32>
    %c0_70 = arith.constant 0 : index
    %c0_71 = arith.constant 0 : index
    %c0_72 = arith.constant 0 : index
    %75 = vector.load %arg7[%c0_70, %c0_71, %c0_72] : memref<10x10x32xbf16, #tpu.memory_space<vmem>>, vector<8x8x32xbf16>
    %76 = vector.shape_cast %75 : vector<8x8x32xbf16> to vector<64x32xbf16>
    %c0_73 = arith.constant 0 : index
    %c0_74 = arith.constant 0 : index
    %c0_75 = arith.constant 0 : index
    %77 = vector.load %arg4[%c0_73, %c0_74, %c0_75] : memref<9x32x32xbf16, #tpu.memory_space<vmem>>, vector<1x32x32xbf16>
    %78 = vector.shape_cast %77 : vector<1x32x32xbf16> to vector<32x32xbf16>
    %cst_76 = arith.constant dense<0.000000e+00> : vector<64x32xf32>
    %79 = tpu.matmul %76, %78, %cst_76 {dimension_numbers = #tpu.dot_dimension_numbers<[1], [0], [0], [1], [0, 0, 1, 1], [], []>} : vector<64x32xbf16>, vector<32x32xbf16>, vector<64x32xf32> -> vector<64x32xf32>
    %80 = arith.addf %74, %79 : vector<64x32xf32>
    %c0_77 = arith.constant 0 : index
    %c1_78 = arith.constant 1 : index
    %c0_79 = arith.constant 0 : index
    %81 = vector.load %arg7[%c0_77, %c1_78, %c0_79] : memref<10x10x32xbf16, #tpu.memory_space<vmem>>, vector<8x8x32xbf16>
    %82 = vector.shape_cast %81 : vector<8x8x32xbf16> to vector<64x32xbf16>
    %c1_80 = arith.constant 1 : index
    %c0_81 = arith.constant 0 : index
    %c0_82 = arith.constant 0 : index
    %83 = vector.load %arg4[%c1_80, %c0_81, %c0_82] : memref<9x32x32xbf16, #tpu.memory_space<vmem>>, vector<1x32x32xbf16>
    %84 = vector.shape_cast %83 : vector<1x32x32xbf16> to vector<32x32xbf16>
    %cst_83 = arith.constant dense<0.000000e+00> : vector<64x32xf32>
    %85 = tpu.matmul %82, %84, %cst_83 {dimension_numbers = #tpu.dot_dimension_numbers<[1], [0], [0], [1], [0, 0, 1, 1], [], []>} : vector<64x32xbf16>, vector<32x32xbf16>, vector<64x32xf32> -> vector<64x32xf32>
    %86 = arith.addf %80, %85 : vector<64x32xf32>
    %c0_84 = arith.constant 0 : index
    %c2_85 = arith.constant 2 : index
    %c0_86 = arith.constant 0 : index
    %87 = vector.load %arg7[%c0_84, %c2_85, %c0_86] : memref<10x10x32xbf16, #tpu.memory_space<vmem>>, vector<8x8x32xbf16>
    %88 = vector.shape_cast %87 : vector<8x8x32xbf16> to vector<64x32xbf16>
    %c2_87 = arith.constant 2 : index
    %c0_88 = arith.constant 0 : index
    %c0_89 = arith.constant 0 : index
    %89 = vector.load %arg4[%c2_87, %c0_88, %c0_89] : memref<9x32x32xbf16, #tpu.memory_space<vmem>>, vector<1x32x32xbf16>
    %90 = vector.shape_cast %89 : vector<1x32x32xbf16> to vector<32x32xbf16>
    %cst_90 = arith.constant dense<0.000000e+00> : vector<64x32xf32>
    %91 = tpu.matmul %88, %90, %cst_90 {dimension_numbers = #tpu.dot_dimension_numbers<[1], [0], [0], [1], [0, 0, 1, 1], [], []>} : vector<64x32xbf16>, vector<32x32xbf16>, vector<64x32xf32> -> vector<64x32xf32>
    %92 = arith.addf %86, %91 : vector<64x32xf32>
    %c1_91 = arith.constant 1 : index
    %c0_92 = arith.constant 0 : index
    %c0_93 = arith.constant 0 : index
    %93 = vector.load %arg7[%c1_91, %c0_92, %c0_93] : memref<10x10x32xbf16, #tpu.memory_space<vmem>>, vector<8x8x32xbf16>
    %94 = vector.shape_cast %93 : vector<8x8x32xbf16> to vector<64x32xbf16>
    %c3_94 = arith.constant 3 : index
    %c0_95 = arith.constant 0 : index
    %c0_96 = arith.constant 0 : index
    %95 = vector.load %arg4[%c3_94, %c0_95, %c0_96] : memref<9x32x32xbf16, #tpu.memory_space<vmem>>, vector<1x32x32xbf16>
    %96 = vector.shape_cast %95 : vector<1x32x32xbf16> to vector<32x32xbf16>
    %cst_97 = arith.constant dense<0.000000e+00> : vector<64x32xf32>
    %97 = tpu.matmul %94, %96, %cst_97 {dimension_numbers = #tpu.dot_dimension_numbers<[1], [0], [0], [1], [0, 0, 1, 1], [], []>} : vector<64x32xbf16>, vector<32x32xbf16>, vector<64x32xf32> -> vector<64x32xf32>
    %98 = arith.addf %92, %97 : vector<64x32xf32>
    %c1_98 = arith.constant 1 : index
    %c1_99 = arith.constant 1 : index
    %c0_100 = arith.constant 0 : index
    %99 = vector.load %arg7[%c1_98, %c1_99, %c0_100] : memref<10x10x32xbf16, #tpu.memory_space<vmem>>, vector<8x8x32xbf16>
    %100 = vector.shape_cast %99 : vector<8x8x32xbf16> to vector<64x32xbf16>
    %c4_101 = arith.constant 4 : index
    %c0_102 = arith.constant 0 : index
    %c0_103 = arith.constant 0 : index
    %101 = vector.load %arg4[%c4_101, %c0_102, %c0_103] : memref<9x32x32xbf16, #tpu.memory_space<vmem>>, vector<1x32x32xbf16>
    %102 = vector.shape_cast %101 : vector<1x32x32xbf16> to vector<32x32xbf16>
    %cst_104 = arith.constant dense<0.000000e+00> : vector<64x32xf32>
    %103 = tpu.matmul %100, %102, %cst_104 {dimension_numbers = #tpu.dot_dimension_numbers<[1], [0], [0], [1], [0, 0, 1, 1], [], []>} : vector<64x32xbf16>, vector<32x32xbf16>, vector<64x32xf32> -> vector<64x32xf32>
    %104 = arith.addf %98, %103 : vector<64x32xf32>
    %c1_105 = arith.constant 1 : index
    %c2_106 = arith.constant 2 : index
    %c0_107 = arith.constant 0 : index
    %105 = vector.load %arg7[%c1_105, %c2_106, %c0_107] : memref<10x10x32xbf16, #tpu.memory_space<vmem>>, vector<8x8x32xbf16>
    %106 = vector.shape_cast %105 : vector<8x8x32xbf16> to vector<64x32xbf16>
    %c5_108 = arith.constant 5 : index
    %c0_109 = arith.constant 0 : index
    %c0_110 = arith.constant 0 : index
    %107 = vector.load %arg4[%c5_108, %c0_109, %c0_110] : memref<9x32x32xbf16, #tpu.memory_space<vmem>>, vector<1x32x32xbf16>
    %108 = vector.shape_cast %107 : vector<1x32x32xbf16> to vector<32x32xbf16>
    %cst_111 = arith.constant dense<0.000000e+00> : vector<64x32xf32>
    %109 = tpu.matmul %106, %108, %cst_111 {dimension_numbers = #tpu.dot_dimension_numbers<[1], [0], [0], [1], [0, 0, 1, 1], [], []>} : vector<64x32xbf16>, vector<32x32xbf16>, vector<64x32xf32> -> vector<64x32xf32>
    %110 = arith.addf %104, %109 : vector<64x32xf32>
    %c2_112 = arith.constant 2 : index
    %c0_113 = arith.constant 0 : index
    %c0_114 = arith.constant 0 : index
    %111 = vector.load %arg7[%c2_112, %c0_113, %c0_114] : memref<10x10x32xbf16, #tpu.memory_space<vmem>>, vector<8x8x32xbf16>
    %112 = vector.shape_cast %111 : vector<8x8x32xbf16> to vector<64x32xbf16>
    %c6_115 = arith.constant 6 : index
    %c0_116 = arith.constant 0 : index
    %c0_117 = arith.constant 0 : index
    %113 = vector.load %arg4[%c6_115, %c0_116, %c0_117] : memref<9x32x32xbf16, #tpu.memory_space<vmem>>, vector<1x32x32xbf16>
    %114 = vector.shape_cast %113 : vector<1x32x32xbf16> to vector<32x32xbf16>
    %cst_118 = arith.constant dense<0.000000e+00> : vector<64x32xf32>
    %115 = tpu.matmul %112, %114, %cst_118 {dimension_numbers = #tpu.dot_dimension_numbers<[1], [0], [0], [1], [0, 0, 1, 1], [], []>} : vector<64x32xbf16>, vector<32x32xbf16>, vector<64x32xf32> -> vector<64x32xf32>
    %116 = arith.addf %110, %115 : vector<64x32xf32>
    %c2_119 = arith.constant 2 : index
    %c1_120 = arith.constant 1 : index
    %c0_121 = arith.constant 0 : index
    %117 = vector.load %arg7[%c2_119, %c1_120, %c0_121] : memref<10x10x32xbf16, #tpu.memory_space<vmem>>, vector<8x8x32xbf16>
    %118 = vector.shape_cast %117 : vector<8x8x32xbf16> to vector<64x32xbf16>
    %c7_122 = arith.constant 7 : index
    %c0_123 = arith.constant 0 : index
    %c0_124 = arith.constant 0 : index
    %119 = vector.load %arg4[%c7_122, %c0_123, %c0_124] : memref<9x32x32xbf16, #tpu.memory_space<vmem>>, vector<1x32x32xbf16>
    %120 = vector.shape_cast %119 : vector<1x32x32xbf16> to vector<32x32xbf16>
    %cst_125 = arith.constant dense<0.000000e+00> : vector<64x32xf32>
    %121 = tpu.matmul %118, %120, %cst_125 {dimension_numbers = #tpu.dot_dimension_numbers<[1], [0], [0], [1], [0, 0, 1, 1], [], []>} : vector<64x32xbf16>, vector<32x32xbf16>, vector<64x32xf32> -> vector<64x32xf32>
    %122 = arith.addf %116, %121 : vector<64x32xf32>
    %c2_126 = arith.constant 2 : index
    %c2_127 = arith.constant 2 : index
    %c0_128 = arith.constant 0 : index
    %123 = vector.load %arg7[%c2_126, %c2_127, %c0_128] : memref<10x10x32xbf16, #tpu.memory_space<vmem>>, vector<8x8x32xbf16>
    %124 = vector.shape_cast %123 : vector<8x8x32xbf16> to vector<64x32xbf16>
    %c8_129 = arith.constant 8 : index
    %c0_130 = arith.constant 0 : index
    %c0_131 = arith.constant 0 : index
    %125 = vector.load %arg4[%c8_129, %c0_130, %c0_131] : memref<9x32x32xbf16, #tpu.memory_space<vmem>>, vector<1x32x32xbf16>
    %126 = vector.shape_cast %125 : vector<1x32x32xbf16> to vector<32x32xbf16>
    %cst_132 = arith.constant dense<0.000000e+00> : vector<64x32xf32>
    %127 = tpu.matmul %124, %126, %cst_132 {dimension_numbers = #tpu.dot_dimension_numbers<[1], [0], [0], [1], [0, 0, 1, 1], [], []>} : vector<64x32xbf16>, vector<32x32xbf16>, vector<64x32xf32> -> vector<64x32xf32>
    %128 = arith.addf %122, %127 : vector<64x32xf32>
    %c0_133 = arith.constant 0 : index
    %c0_134 = arith.constant 0 : index
    %129 = vector.load %arg5[%c0_133, %c0_134] : memref<1x32xf32, #tpu.memory_space<vmem>>, vector<1x32xf32>
    %130 = vector.broadcast %129 : vector<1x32xf32> to vector<64x32xf32>
    %131 = arith.addf %128, %130 : vector<64x32xf32>
    %cst_135 = arith.constant 0.000000e+00 : f32
    %132 = vector.broadcast %cst_135 : f32 to vector<64x32xf32>
    %133 = arith.maximumf %131, %132 : vector<64x32xf32>
    %134 = vector.shape_cast %133 : vector<64x32xf32> to vector<8x8x32xf32>
    %135 = arith.truncf %134 : vector<8x8x32xf32> to vector<8x8x32xbf16>
    %c0_136 = arith.constant 0 : index
    %c0_137 = arith.constant 0 : index
    %c0_138 = arith.constant 0 : index
    %c0_139 = arith.constant 0 : index
    %136 = vector.load %arg6[%c0_136, %c0_137, %c0_138, %c0_139] : memref<1x8x8x32xbf16, #tpu.memory_space<vmem>>, vector<1x8x8x32xbf16>
    %137 = vector.shape_cast %136 : vector<1x8x8x32xbf16> to vector<8x8x32xbf16>
    %138 = vector.shape_cast %135 : vector<8x8x32xbf16> to vector<1x8x8x32xbf16>
    tpu.vector_store %arg6[%c0_136, %c0_137, %c0_138, %c0_139], %138 {strides = array<i32>} : memref<1x8x8x32xbf16, #tpu.memory_space<vmem>>, vector<1x8x8x32xbf16>,
    return
  }
  func.func @transform_0(%arg0: i32) -> (i32, i32, i32, i32) {
    %c0_i32 = arith.constant 0 : i32
    %c0_i32_0 = arith.constant 0 : i32
    %c0_i32_1 = arith.constant 0 : i32
    %c0_i32_2 = arith.constant 0 : i32
    return %arg0, %c0_i32, %c0_i32_0, %c0_i32_1 : i32, i32, i32, i32
  }
  func.func @transform_1(%arg0: i32) -> (i32, i32, i32) {
    %c0_i32 = arith.constant 0 : i32
    %c0_i32_0 = arith.constant 0 : i32
    %c0_i32_1 = arith.constant 0 : i32
    %c0_i32_2 = arith.constant 0 : i32
    return %c0_i32, %c0_i32_0, %c0_i32_1 : i32, i32, i32
  }
  func.func @transform_2(%arg0: i32) -> (i32, i32) {
    %c0_i32 = arith.constant 0 : i32
    %c0_i32_0 = arith.constant 0 : i32
    %c0_i32_1 = arith.constant 0 : i32
    return %c0_i32, %c0_i32_0 : i32, i32
  }
  func.func @transform_3(%arg0: i32) -> (i32, i32, i32) {
    %c0_i32 = arith.constant 0 : i32
    %c0_i32_0 = arith.constant 0 : i32
    %c0_i32_1 = arith.constant 0 : i32
    %c0_i32_2 = arith.constant 0 : i32
    return %c0_i32, %c0_i32_0, %c0_i32_1 : i32, i32, i32
  }
  func.func @transform_4(%arg0: i32) -> (i32, i32) {
    %c0_i32 = arith.constant 0 : i32
    %c0_i32_0 = arith.constant 0 : i32
    %c0_i32_1 = arith.constant 0 : i32
    return %c0_i32, %c0_i32_0 : i32, i32
  }
  func.func @transform_5(%arg0: i32) -> (i32, i32, i32, i32) {
    %c0_i32 = arith.constant 0 : i32
    %c0_i32_0 = arith.constant 0 : i32
    %c0_i32_1 = arith.constant 0 : i32
    %c0_i32_2 = arith.constant 0 : i32
    return %arg0, %c0_i32, %c0_i32_0, %c0_i32_1 : i32, i32, i32, i32
  }
}

</mosaic_0001>

<bundles_post_ra>
// kernel: basic_block_forward.1
= control target key start
LH: loop header
LB: loop body
LE: loop exit
PB: predicated region body
PF: predicated region fallthrough
CT: control target
= control target key end

     0   :  { %10 = vsyncpa [#allocation4], 0  ;;  %s5304_s0 = inlined_call_operand.vmem [shape: bf16[2,36,9,16], index: 0, kind: input, shape index: {}]   ;;  %s5305_s1 = inlined_call_operand.vmem [shape: bf16[9,16,32], index: 1, kind: input, shape index: {}]   ;;  %s5306_s2 = inlined_call_operand.vmem [shape: f32[1,32], index: 2, kind: input, shape index: {}]   ;;  %s5307_s3 = inlined_call_operand.vmem [shape: bf16[9,32,32], index: 3, kind: input, shape index: {}]   ;;  %s5308_s4 = inlined_call_operand.vmem [shape: f32[1,32], index: 4, kind: input, shape index: {}]   ;;  %s5309_s5 = inlined_call_operand.hbm [shape: bf16[2,8,8,32], index: 5, kind: output, shape index: {}]  }
   0x1   :  { %12 = vsyncpa [#allocation4 + $0x1], 0  ;;  %s4557_s18 = smov 0   ;;  %s4559_s19 = smov 0  }
   0x2   :  { %s4561_s20 = smov 0   ;;  %s4563_s21 = smov 0  }
   0x3 LB: > { %s4578_s22 = sadd.s32 4294967295, %s4521_s21   ;;  %s3583_s23 = sadd.s32 4294967294, %s4521_s21   ;;  %s4521_s21 = sphi %s4563_s21, %s5323_s21   ;;  %s4517_s20 = sphi %s4561_s20, %s5322_s20   ;;  %s4513_s19 = sphi %s4559_s19, %s5321_s19   ;;  %s4509_s18 = sphi %s4557_s18, %s5320_s18  }
   0x4   : > { %s4582_s24 = sadd.s32 1, %s4521_s21   ;;  %s135_s25 = sadd.s32 1, %s4517_s20 }
   0x5   : > { %s132_s26 = ssub.s32 %s4521_s21, %s4582_s24  ;;  %p145_p0 = scmp.ne.s32.totalorder %s4517_s20, %s4513_s19 }
   0x6   : > { %p133_p1 = scmp.eq.s32.totalorder %s132_s26, 0  ;;  %p146_p2 = scmp.eq.s32.totalorder %s4578_s22, 1 }
   0x7   : > { %p151_p3 = scmp.ne.s32.totalorder %s4513_s19, %s4509_s18  ;;  %p152_p4 = scmp.eq.s32.totalorder %s3583_s23, 1 }
   0x8   : > { %s4593_s27 = scalar_select %p133_p1, %s4517_s20, %s135_s25  }
   0x9   : > { %p4595_p5 = por %p146_p2, %p145_p0  ;;  %p4599_p6 = por %p152_p4, %p151_p3 }
   0xa   : > { %p3586_p7 = scmp.ge.s32.totalorder %s4521_s21, 1  ;;  %p190_p8 = scmp.lt.s32.totalorder %s4521_s21, 3 }
   0xc   : > { %p191_p9 = pnand %p3586_p7, %p190_p8 }
   0xd   : > { %v4396_v0 = vld [vmem:[%s5305_s1 + $0x8] sm:$0xff] (!%p191_p9)   ;;  %p218_p10 = scmp.lt.s32.totalorder (!%p191_p9), %s4578_s22, 1  ;;  %v4398_v1 = vld [vmem:[%s5305_s1] sm:$0xff] (!%p191_p9)   ;;  %vm272_vm0 = vcmask (!%p191_p9), 130048   ;;  %v4621_v2 = vld [vmem:[%s5305_s1 + $0x10] sm:$0xff] (!%p191_p9)   ;;  %vm1673_vm4 = vcmask (!%p191_p9), 257024  }
   0xe   : > { %194 = sbr.rel (%p191_p9) target bundleno = 781 (0x30d), region = 40  ;;  %4027 = vmatprep.subr.bf16.mxu0 (!%p191_p9), %v4396_v0  ;;  %vm469_vm1 = vsmask.f32 (!%p191_p9), 3328  ;;  %vm470_vm2 = vsmask.f32 (!%p191_p9), 7440  ;;  %v4407_v48 = vld [vmem:[%s5305_s1 + $0x18] sm:$0xff] (!%p191_p9)  }
   0xf   : > { %4028 = vmatpush3.bf16.msra.mxu0 (!%p191_p9), %v4396_v0  ;;  %vm4647_vm3 = vmor (!%p191_p9), %vm469_vm1, %vm470_vm2  ;;  %vm1675_vm5 = vcmask (!%p191_p9), 253952   ;;  %vm1809_vm6 = vsmask.f32 (!%p191_p9), 7938  ;;  %vm1815_vm7 = vsmask.f32 (!%p191_p9), 256  ;;  %vm2023_vm10 = vcmask (!%p191_p9), 261120  }
  0x10   : > { %4037 = vmatprep.subr.bf16.mxu0 (!%p191_p9), %v4398_v1  ;;  %vm4867_vm8 = vmand (!%p191_p9), %vm1673_vm4, %vm1809_vm6  ;;  %vm2234_vm11 = vcmask (!%p191_p9), 1042432   ;;  %vm2235_vm12 = vcmask (!%p191_p9), 1046532   ;;  %s215_s23 = sand.u32 (!%p191_p9), 1, %s4513_s19   ;;  %s3927_s7 = sshll.u32 (!%p191_p9), %s4578_s22, 9 }
  0x11   : > { %vm4874_vm9 = vmand (!%p191_p9), %vm1675_vm5, %vm1815_vm7  ;;  %s3587_s30 = sshll.u32 (!%p191_p9), %s215_s23, 5  ;;  %s5254_s11 = scalar_lea.hbm (!%p191_p9), %s5309_s5, %s3927_s7 }
  0x12   : > { %vm5010_vm13 = vmor (!%p191_p9), %vm2234_vm11, %vm2235_vm12  ;;  %s217_s6 = scalar_lea.vmem (!%p191_p9), [#allocation3], %s3587_s30 }
  0x13   : > { %s3521_s8 = sshll.u32 (!%p191_p9), %s217_s6, 4  ;;  %s5256_s8 = int_to_ptr.vmem [resolvable:$true] %s3521_s8 }
  0x14   : > { %s4459_s12 = scalar_lea.vmem (!%p191_p9), %s5256_s8, 512 }
  0x15   : > { %s219_s9 = scalar_select %p218_p10, %s4578_s22, 1 }
  0x16   : > { %s5263_s22 = scalar_lea.sflag [#allocation4], %s215_s23  ;;  %p4460_p11 = scmp.ne.s32.totalorder %s5256_s8, %s4459_s12 }
  0x17   : > { %s4353_s10 = smul.u32 288, %s219_s9 }
  0x18   : > { %p4461_p12 = pnand %p4460_p11, %p4595_p5 }
  0x19   : > { %s4616_s13 = scalar_lea.vmem %s5304_s0, %s4353_s10 }
  0x1a   : > { %v4397_v3 = vld [vmem:[%s4616_s13 + $0x48] ss:$8 sps:$4 sm:$0xff]   ;;  %v4399_v4 = vld [vmem:[%s4616_s13 + $0x58] ss:$8 sps:$4 sm:$0xff]   ;;  %v454_v9 = vld [vmem:[%s4616_s13 + $0x4] sm:$0x1]  ;;  %p4462_p13 = pneg %p4461_p12 }
  0x1b   : > { %4029 = vmatprep.mubr.msk.bf16.mxu0 %vm272_vm0, %v4397_v3  ;;  %v4400_v5 = vld [vmem:[%s4616_s13 + $0x68] ss:$8 sps:$4 sm:$0xff]   ;;  %v4401_v6 = vld [vmem:[%s4616_s13 + $0x78] ss:$8 sps:$4 sm:$0xff]   ;;  %v456_v11 = vld [vmem:[%s4616_s13 + $0xc] sm:$0x1] }
  0x1c   : > { %4030 = vmatmul.mubr.msk.bf16.vlgmr.msra.gmra.mrb[0].mxu0 %vm272_vm0, %v4399_v4  ;;  %v4402_v7 = vld [vmem:[%s4616_s13] ss:$8 sps:$4 sm:$0xff]   ;;  %v482_v15 = vshll.u32 %v454_v9, 16  ;;  %v457_v17 = vld [vmem:[%s4616_s13 + $0x10] sm:$0xf]  ;;  %v496_v21 = vshll.u32 %v456_v11, 16 }
  0x1d   : > { %4038 = vmatpush3.bf16.msra.mxu0 %v4398_v1  ;;  %4033 = vmatprep.mubr.msk.bf16.mxu0 %vm272_vm0, %v4400_v5  ;;  %v453_v8 = vld [vmem:[%s4616_s13] sm:$0xf]  ;;  %v455_v10 = vld [vmem:[%s4616_s13 + $0x8] sm:$0xf]  ;;  %v459_v22 = vld [vmem:[%s4616_s13 + $0x18] sm:$0xf] }
  0x1e   : > { %4047 = vmatprep.subr.bf16.mxu0 %v4621_v2  ;;  %v473_v12 = vshrl.u32 %v453_v8, 16  ;;  %v476_v13 = vshll.u32 %v453_v8, 16  ;;  %v487_v14 = vshrl.u32 %v455_v10, 16  ;;  %v490_v16 = vshll.u32 %v455_v10, 16  ;;  %v4404_v26 = vld [vmem:[%s4616_s13 + $0x10] ss:$8 sps:$4 sm:$0xff]  }
  0x1f   : > { %v501_v24 = vshrl.u32 %v457_v17, 16  ;;  %v504_v25 = vshll.u32 %v457_v17, 16  ;;  %v458_v28 = vld [vmem:[%s4616_s13 + $0x14] sm:$0x1]  ;;  %v515_v29 = vshrl.u32 %v459_v22, 16  ;;  %v518_v30 = vshll.u32 %v459_v22, 16 }
  0x20   : > { %v475_v18 = vrot.slane %v473_v12, 4  ;;  %v478_v19 = vrot.slane %v476_v13, 5  ;;  %v489_v20 = vrot.slane %v487_v14, 4  ;;  %v492_v23 = vrot.slane %v490_v16, 5  ;;  %v461_v31 = vld [vmem:[%s4616_s13 + $0x20] sm:$0xf] }
  0x21   : > { %v4405_v32 = vld [vmem:[%s4616_s13 + $0x20] ss:$8 sps:$4 sm:$0xff]   ;;  %v484_v33 = vrot.slane %v482_v15, 5  ;;  %v460_v35 = vld [vmem:[%s4616_s13 + $0x1c] sm:$0x1]  ;;  %v503_v36 = vrot.slane %v501_v24, 4 }
  0x22   : > { %v479_v27 = vor.u32 %v478_v19, %v475_v18  ;;  %v493_v34 = vor.u32 %v492_v23, %v489_v20  ;;  %v506_v37 = vrot.slane %v504_v25, 5  ;;  %v498_v40 = vrot.slane %v496_v21, 5  ;;  %v463_v43 = vld [vmem:[%s4616_s13 + $0x28] sm:$0xf]  ;;  %v462_v46 = vld [vmem:[%s4616_s13 + $0x24] sm:$0x1] }
  0x23   : > { %v517_v41 = vrot.slane %v515_v29, 4  ;;  %v520_v42 = vrot.slane %v518_v30, 5  ;;  %v510_v45 = vshll.u32 %v458_v28, 16  ;;  %v529_v47 = vshrl.u32 %v461_v31, 16  ;;  %v464_v50 = vld [vmem:[%s4616_s13 + $0x2c] sm:$0x1] }
  0x24   : > { %4034 = vmatmul.mubr.msk.bf16.gmra.mrb[4].mxu0 %vm272_vm0, %v4401_v6  ;;  %v480_v39 = vrot.slane %v479_v27, 4  ;;  %v494_v44 = vrot.slane %v493_v34, 4  ;;  %v524_v49 = vshll.u32 %v460_v35, 16  ;;  %v532_v51 = vshll.u32 %v461_v31, 16  ;;  %v465_v56 = vld [vmem:[%s4616_s13 + $0x30] sm:$0xf] }
  0x25   : > { %4039 = vmatprep.mubr.msk.bf16.mxu0 %vm272_vm0, %v4402_v7  ;;  %v507_v53 = vor.u32 %v506_v37, %v503_v36  ;;  %v531_v54 = vrot.slane %v529_v47, 4  ;;  %v543_v55 = vshrl.u32 %v463_v43, 16  ;;  %v521_v58 = vor.u32 %v520_v42, %v517_v41  ;;  %v467_v61 = vld [vmem:[%s4616_s13 + $0x38] sm:$0xf]  ;;  %v466_v11 = vld [vmem:[%s4616_s13 + $0x34] sm:$0x1] }
  0x26   : > { %v485_v52 = vsel %vm4647_vm3, %v480_v39, %v484_v33  ;;  %v499_v57 = vsel %vm4647_vm3, %v494_v44, %v498_v40  ;;  %v534_v59 = vrot.slane %v532_v51, 5  ;;  %v538_v60 = vshll.u32 %v462_v46, 16  ;;  %v4406_v3 = vld [vmem:[%s4616_s13 + $0x30] ss:$8 sps:$4 sm:$0xff]   ;;  %v468_v16 = vld [vmem:[%s4616_s13 + $0x3c] sm:$0x1] }
  0x27   : > { %v512_v62 = vrot.slane %v510_v45, 5  ;;  %v545_v63 = vrot.slane %v543_v55, 4  ;;  %v546_v0 = vshll.u32 %v463_v43, 16  ;;  %v552_v1 = vshll.u32 %v464_v50, 16  ;;  %v4409_v39 = vld [vmem:[%s5305_s1 + $0x20] sm:$0xff]   ;;  %v4697_v47 = vld [vmem:[%s5305_s1 + $0x28] sm:$0xff]  }
  0x28   : > { %v526_v4 = vrot.slane %v524_v49, 5  ;;  %v535_v5 = vor.u32 %v534_v59, %v531_v54  ;;  %v557_v6 = vshrl.u32 %v465_v56, 16  ;;  %v560_v7 = vshll.u32 %v465_v56, 16  ;;  %v4408_v43 = vld [vmem:[%s4616_s13 + $0x90] ss:$8 sps:$4 sm:$0xff]  }
  0x29   : > { %v3619_v8 = vcombine.low %v485_v52, %v499_v57  ;;  %v508_v9 = vrot.slane %v507_v53, 4  ;;  %v548_v10 = vrot.slane %v546_v0, 5  ;;  %v522_v12 = vrot.slane %v521_v58, 4  ;;  %v4410_v44 = vld [vmem:[%s4616_s13 + $0xa0] ss:$8 sps:$4 sm:$0xff]  }
  0x2a   : > { %v540_v13 = vrot.slane %v538_v60, 5  ;;  %v571_v14 = vshrl.u32 %v467_v61, 16  ;;  %v559_v17 = vrot.slane %v557_v6, 4  ;;  %v562_v18 = vrot.slane %v560_v7, 5  ;;  %v3666_v45 = vld [vmem:[%s4616_s13 + $0x90] sm:$0xf] }
  0x2b   : > { %v549_v15 = vor.u32 %v548_v10, %v545_v63  ;;  %v574_v19 = vshll.u32 %v467_v61, 16  ;;  %v536_v20 = vrot.slane %v535_v5, 4  ;;  %v513_v24 = vsel %vm4647_vm3, %v508_v9, %v512_v62  ;;  %v4411_v46 = vld [vmem:[%s4616_s13 + $0xb0] ss:$8 sps:$4 sm:$0xff]   ;;  %v4412_v53 = vld [vmem:[%s4616_s13 + $0xc0] ss:$8 sps:$4 sm:$0xff]  }
  0x2c   : > { %4040 = vmatmul.mubr.msk.bf16.vlgmr.msra.gmra.mrb[0].mxu0 %vm272_vm0, %v4404_v26  ;;  %v573_v21 = vrot.slane %v571_v14, 4  ;;  %v566_v25 = vshll.u32 %v466_v11, 16  ;;  %v527_v26 = vsel %vm4647_vm3, %v522_v12, %v526_v4  ;;  %v563_v27 = vor.u32 %v562_v18, %v559_v17  ;;  %v3670_v54 = vld [vmem:[%s4616_s13 + $0xa0] sm:$0xf]  ;;  %v3667_v58 = vld [vmem:[%s4616_s13 + $0x94] sm:$0x1] }
  0x2d   : > { %4048 = vmatpush3.bf16.msra.mxu0 %v4621_v2  ;;  %4043 = vmatprep.mubr.msk.bf16.mxu0 %vm272_vm0, %v4405_v32  ;;  %v554_v2 = vrot.slane %v552_v1, 5  ;;  %v550_v22 = vrot.slane %v549_v15, 4  ;;  %v576_v23 = vrot.slane %v574_v19, 5  ;;  %v580_v29 = vshll.u32 %v468_v16, 16  ;;  %v4413_v55 = vld [vmem:[%s4616_s13 + $0xd8] ss:$8 sps:$4 sm:$0xff]  }
  0x2e   : > { %4057 = vmatprep.subr.bf16.mxu0 %v4407_v48  ;;  %v541_v30 = vsel %vm4647_vm3, %v536_v20, %v540_v13  ;;  %v3620_v32 = vcombine.low %v513_v24, %v527_v26  ;;  %v568_v33 = vrot.slane %v566_v25, 5  ;;  %v564_v35 = vrot.slane %v563_v27, 4  ;;  %v3669_v59 = vld [vmem:[%s4616_s13 + $0x9c] sm:$0x1]  ;;  %v3672_v62 = vld [vmem:[%s4616_s13 + $0xa8] sm:$0xf] }
  0x2f   : > { %v577_v28 = vor.u32 %v576_v23, %v573_v21  ;;  %v555_v31 = vsel %vm4647_vm3, %v550_v22, %v554_v2  ;;  %v582_v37 = vrot.slane %v580_v29, 5  ;;  %v953_v49 = vshrl.u32 %v3666_v45, 16  ;;  %v3674_v1 = vld [vmem:[%s4616_s13 + $0xb0] sm:$0xf]  ;;  %v4416_v14 = vld [vmem:[%s4616_s13 + $0xf8] ss:$8 sps:$4 sm:$0xff]  }
  0x30   : > { %v3621_v34 = vcombine.low %v541_v30, %v555_v31  ;;  %v569_v40 = vsel %vm4647_vm3, %v564_v35, %v568_v33  ;;  %v956_v50 = vshll.u32 %v3666_v45, 16  ;;  %v981_v63 = vshrl.u32 %v3670_v54, 16  ;;  %v4415_v10 = vld [vmem:[%s4616_s13 + $0xe8] ss:$8 sps:$4 sm:$0xff]   ;;  %v3671_v15 = vld [vmem:[%s4616_s13 + $0xa4] sm:$0x1] }
  0x31   : > { %v578_v36 = vrot.slane %v577_v28, 4  ;;  %v955_v56 = vrot.slane %v953_v49, 4  ;;  %v984_v0 = vshll.u32 %v3670_v54, 16  ;;  %v995_v4 = vshrl.u32 %v3672_v62, 16  ;;  %v4719_v18 = vld [vmem:[%s5305_s1 + $0x30] sm:$0xff]  }
  0x32   : > { %v958_v57 = vrot.slane %v956_v50, 5  ;;  %v998_v5 = vshll.u32 %v3672_v62, 16  ;;  %v962_v7 = vshll.u32 %v3667_v58, 16  ;;  %v976_v9 = vshll.u32 %v3669_v59, 16  ;;  %v3678_v21 = vld [vmem:[%s4616_s13 + $0xc0] sm:$0xf] }
  0x33   : > { %v583_v41 = vsel %vm4647_vm3, %v578_v36, %v582_v37  ;;  %v1009_v11 = vshrl.u32 %v3674_v1, 16  ;;  %v1012_v12 = vshll.u32 %v3674_v1, 16  ;;  %v983_v16 = vrot.slane %v981_v63, 4  ;;  %v3680_v22 = vld [vmem:[%s4616_s13 + $0xc8] sm:$0xf] }
  0x34   : > { %4044 = vmatmul.mubr.msk.bf16.gmra.mrb[4].mxu0 %vm272_vm0, %v4406_v3  ;;  %v3622_v42 = vcombine.low %v569_v40, %v583_v41  ;;  %v3676_v3 = vld [vmem:[%s4616_s13 + $0xb8] sm:$0xf]  ;;  %v959_v6 = vor.u32 %v958_v57, %v955_v56  ;;  %v986_v17 = vrot.slane %v984_v0, 5  ;;  %v997_v19 = vrot.slane %v995_v4, 4  ;;  %v3673_v27 = vld [vmem:[%s4616_s13 + $0xac] sm:$0x1] }
  0x35   : > { %4049 = vmatprep.mubr.msk.bf16.mxu0 %vm272_vm0, %v3619_v8  ;;  %v1023_v13 = vshrl.u32 %v3676_v3, 16  ;;  %v1026_v2 = vshll.u32 %v3676_v3, 16  ;;  %v1000_v20 = vrot.slane %v998_v5, 5  ;;  %v964_v24 = vrot.slane %v962_v7, 5  ;;  %v3675_v28 = vld [vmem:[%s4616_s13 + $0xb4] sm:$0x1] }
  0x36   : > { %v960_v23 = vrot.slane %v959_v6, 4  ;;  %v978_v26 = vrot.slane %v976_v9, 5  ;;  %v1011_v29 = vrot.slane %v1009_v11, 4  ;;  %v1014_v30 = vrot.slane %v1012_v12, 5  ;;  %v3677_v33 = vld [vmem:[%s4616_s13 + $0xbc] sm:$0x1] }
  0x37   : > { %v1025_v31 = vrot.slane %v1023_v13, 4  ;;  %v1040_v35 = vshll.u32 %v3678_v21, 16  ;;  %v1051_v36 = vshrl.u32 %v3680_v22, 16  ;;  %v1054_v37 = vshll.u32 %v3680_v22, 16  ;;  %v4417_v45 = vld [vmem:[%s4616_s13 + $0x108] ss:$8 sps:$4 sm:$0xff]  }
  0x38   : > { %v990_v40 = vshll.u32 %v3671_v15, 16  ;;  %v1001_v41 = vor.u32 %v1000_v20, %v997_v19  ;;  %v1032_v50 = vshll.u32 %v3677_v33, 16  ;;  %v4420_v15 = vld [vmem:[%s5305_s1 + $0x38] sm:$0xff]   ;;  %v4419_v20 = vld [vmem:[%s4616_s13 + $0x8] ss:$8 sps:$4 sm:$0xff]  }
  0x39   : > { %v1042_v54 = vrot.slane %v1040_v35, 5  ;;  %v3731_v22 = vld [vmem:[%s4616_s13 + $0x8] sm:$0xf] }
  0x3a   : > { %v992_v57 = vrot.slane %v990_v40, 5  ;;  %v1002_v58 = vrot.slane %v1001_v41, 4  ;;  %v1034_v1 = vrot.slane %v1032_v50, 5 }
  0x3c   : > { %4050 = vmatmul.mubr.msk.bf16.vlgmr.msra.gmra.mrb[0].mxu0 %vm272_vm0, %v3620_v32  ;;  %v1028_v32 = vrot.slane %v1026_v2, 5 }
  0x3d   : > { %4058 = vmatpush3.bf16.msra.mxu0 %v4407_v48  ;;  %4053 = vmatprep.mubr.msk.bf16.mxu0 %vm272_vm0, %v3621_v34  ;;  %v3668_v48 = vld [vmem:[%s4616_s13 + $0x98] sm:$0xf]  ;;  %v1037_v34 = vshrl.u32 %v3678_v21, 16 }
  0x3e   : > { %4067 = vmatprep.subr.bf16.mxu0 %v4409_v39  ;;  %v967_v51 = vshrl.u32 %v3668_v48, 16  ;;  %v970_v52 = vshll.u32 %v3668_v48, 16  ;;  %v1015_v48 = vor.u32 %v1014_v30, %v1011_v29  ;;  %v1029_v49 = vor.u32 %v1028_v32, %v1025_v31  ;;  %v4421_v21 = vld [vmem:[%s4616_s13 + $0x18] ss:$8 sps:$4 sm:$0xff]   ;;  %v3732_v30 = vld [vmem:[%s4616_s13 + $0xc] sm:$0x1] }
  0x3f   : > { %v4423_v29 = vld [vmem:[%s4616_s13 + $0x38] ss:$8 sps:$4 sm:$0xff]   ;;  %v3734_v31 = vld [vmem:[%s4616_s13 + $0x14] sm:$0x1]  ;;  %v1442_v40 = vshll.u32 %v3732_v30, 16 }
  0x40   : > { %v969_v60 = vrot.slane %v967_v51, 4  ;;  %v972_v61 = vrot.slane %v970_v52, 5  ;;  %v3679_v51 = vld [vmem:[%s4616_s13 + $0xc4] sm:$0x1]  ;;  %v3681_v52 = vld [vmem:[%s4616_s13 + $0xcc] sm:$0x1] }
  0x41   : > { %v1046_v62 = vshll.u32 %v3679_v51, 16  ;;  %v1016_v63 = vrot.slane %v1015_v48, 4  ;;  %v1030_v0 = vrot.slane %v1029_v49, 4  ;;  %v1060_v3 = vshll.u32 %v3681_v52, 16  ;;  %v4426_v51 = vld [vmem:[%s4616_s13 + $0x60] ss:$8 sps:$4 sm:$0xff]  }
  0x42   : > { %v973_v8 = vor.u32 %v972_v61, %v969_v60  ;;  %v1456_v41 = vshll.u32 %v3734_v31, 16  ;;  %v3744_v31 = vld [vmem:[%s4616_s13 + $0x3c] sm:$0x1] }
  0x43   : > { %v1035_v9 = vsel %vm4647_vm3, %v1030_v0, %v1034_v1  ;;  %v1062_v11 = vrot.slane %v1060_v3, 5  ;;  %v4427_v1 = vld [vmem:[%s4616_s13 + $0x70] ss:$8 sps:$4 sm:$0xff]  }
  0x44   : > { %4054 = vmatmul.mubr.msk.bf16.gmra.mrb[4].mxu0 %vm272_vm0, %v3622_v42  ;;  %v974_v25 = vrot.slane %v973_v8, 4  ;;  %v1004_v42 = vshll.u32 %v3673_v27, 16  ;;  %v3743_v3 = vld [vmem:[%s4616_s13 + $0x38] sm:$0xf] }
  0x45   : > { %4059 = vmatprep.mubr.msk.bf16.mxu0 %vm272_vm0, %v4408_v43  ;;  %v965_v43 = vsel %vm4647_vm3, %v960_v23, %v964_v24  ;;  %v3733_v23 = vld [vmem:[%s4616_s13 + $0x10] sm:$0xf]  ;;  %v4425_v24 = vld [vmem:[%s5305_s1 + $0x40] sm:$0xff]  }
  0x46   : > { %v1006_v59 = vrot.slane %v1004_v42, 5  ;;  %v1447_v27 = vshrl.u32 %v3733_v23, 16 }
  0x48   : > { %v1007_v7 = vsel %vm4647_vm3, %v1002_v58, %v1006_v59 }
  0x4c   : > { %4060 = vmatmul.mubr.msk.bf16.vlgmr.msra.gmra.mrb[0].mxu0 %vm272_vm0, %v4410_v44  ;;  %v1018_v44 = vshll.u32 %v3675_v28, 16  ;;  %v1450_v28 = vshll.u32 %v3733_v23, 16 }
  0x4d   : > { %4068 = vmatpush3.bf16.msra.mxu0 %v4409_v39  ;;  %4063 = vmatprep.mubr.msk.bf16.mxu0 %vm272_vm0, %v4411_v46  ;;  %v987_v39 = vor.u32 %v986_v17, %v983_v16  ;;  %v979_v46 = vsel %vm4647_vm3, %v974_v25, %v978_v26  ;;  %v1433_v25 = vshrl.u32 %v3731_v22, 16  ;;  %v1436_v26 = vshll.u32 %v3731_v22, 16 }
  0x4e   : > { %4077 = vmatprep.subr.bf16.mxu0 %v4697_v47  ;;  %v3684_v60 = vcombine.low %v965_v43, %v979_v46  ;;  %v1020_v61 = vrot.slane %v1018_v44, 5  ;;  %v1452_v35 = vrot.slane %v1450_v28, 5  ;;  %v3739_v44 = vld [vmem:[%s4616_s13 + $0x28] sm:$0xf] }
  0x4f   : > { %v988_v56 = vrot.slane %v987_v39, 4  ;;  %v1435_v32 = vrot.slane %v1433_v25, 4  ;;  %v1438_v33 = vrot.slane %v1436_v26, 5  ;;  %v3737_v39 = vld [vmem:[%s4616_s13 + $0x20] sm:$0xf]  ;;  %v1489_v52 = vshrl.u32 %v3739_v44, 16 }
  0x50   : > { %v1021_v8 = vsel %vm4647_vm3, %v1016_v63, %v1020_v61  ;;  %v1475_v49 = vshrl.u32 %v3737_v39, 16  ;;  %v1478_v50 = vshll.u32 %v3737_v39, 16  ;;  %v4428_v26 = vld [vmem:[%s4616_s13 + $0x80] ss:$8 sps:$4 sm:$0xff]  }
  0x51   : > { %v993_v6 = vsel %vm4647_vm3, %v988_v56, %v992_v57  ;;  %v1439_v46 = vor.u32 %v1438_v33, %v1435_v32  ;;  %v1458_v56 = vrot.slane %v1456_v41, 5  ;;  %v3736_v57 = vld [vmem:[%s4616_s13 + $0x1c] sm:$0x1] }
  0x52   : > { %v3685_v2 = vcombine.low %v993_v6, %v1007_v7  ;;  %v1477_v63 = vrot.slane %v1475_v49, 4  ;;  %v1480_v0 = vrot.slane %v1478_v50, 5 }
  0x54   : > { %4064 = vmatmul.mubr.msk.bf16.gmra.mrb[4].mxu0 %vm272_vm0, %v4412_v53  ;;  %v1039_v53 = vrot.slane %v1037_v34, 4  ;;  %v1449_v34 = vrot.slane %v1447_v27, 4 }
  0x55   : > { %4069 = vmatprep.mubr.msk.bf16.mxu0 %vm272_vm0, %v4413_v55  ;;  %v1056_v55 = vrot.slane %v1054_v37, 5  ;;  %v4424_v37 = vld [vmem:[%s4616_s13 + $0x50] ss:$8 sps:$4 sm:$0xff]  }
  0x56   : > { %v1043_v4 = vor.u32 %v1042_v54, %v1039_v53  ;;  %v1453_v48 = vor.u32 %v1452_v35, %v1449_v34  ;;  %v1492_v53 = vshll.u32 %v3739_v44, 16 }
  0x58   : > { %v1044_v12 = vrot.slane %v1043_v4, 4  ;;  %v1454_v61 = vrot.slane %v1453_v48, 4  ;;  %v1491_v4 = vrot.slane %v1489_v52, 4 }
  0x5c   : > { %4070 = vmatmul.mubr.msk.bf16.vlgmr.msra.gmra.mrb[0].mxu0 %vm272_vm0, %v4415_v10  ;;  %v1048_v10 = vrot.slane %v1046_v62, 5  ;;  %v3738_v62 = vld [vmem:[%s4616_s13 + $0x24] sm:$0x1] }
  0x5d   : > { %4078 = vmatpush3.bf16.msra.mxu0 %v4697_v47  ;;  %4073 = vmatprep.mubr.msk.bf16.mxu0 %vm272_vm0, %v4416_v14  ;;  %v1053_v47 = vrot.slane %v1051_v36, 4  ;;  %v3686_v14 = vcombine.low %v1021_v8, %v1035_v9  ;;  %v3735_v36 = vld [vmem:[%s4616_s13 + $0x18] sm:$0xf]  ;;  %v3745_v8 = vld [vmem:[%s4616_s13 + $0x40] sm:$0xf]  ;;  %v1470_v9 = vshll.u32 %v3736_v57, 16 }
  0x5e   : > { %4087 = vmatprep.subr.bf16.mxu0 %v4719_v18  ;;  %v1049_v16 = vsel %vm4647_vm3, %v1044_v12, %v1048_v10  ;;  %v1461_v42 = vshrl.u32 %v3735_v36, 16  ;;  %v1464_v43 = vshll.u32 %v3735_v36, 16  ;;  %v1484_v10 = vshll.u32 %v3738_v62, 16  ;;  %v3742_v12 = vld [vmem:[%s4616_s13 + $0x34] sm:$0x1] }
  0x5f   : > { %v1057_v5 = vor.u32 %v1056_v55, %v1053_v47  ;;  %v1444_v55 = vrot.slane %v1442_v40, 5  ;;  %v1512_v23 = vshll.u32 %v3742_v12, 16  ;;  %v1472_v25 = vrot.slane %v1470_v9, 5  ;;  %v3746_v40 = vld [vmem:[%s4616_s13 + $0x44] sm:$0x1] }
  0x60   : > { %v1463_v58 = vrot.slane %v1461_v42, 4  ;;  %v1466_v59 = vrot.slane %v1464_v43, 5  ;;  %v1486_v30 = vrot.slane %v1484_v10, 5  ;;  %v1526_v42 = vshll.u32 %v3744_v31, 16  ;;  %v4848_v62 = vld [vmem:[%s5306_s2] ss:$0 sm:$0xff] }
  0x61   : > { %v1058_v13 = vrot.slane %v1057_v5, 4  ;;  %v1494_v5 = vrot.slane %v1492_v53, 5  ;;  %v1514_v39 = vrot.slane %v1512_v23, 5 }
  0x63   : > { %v1063_v17 = vsel %vm4647_vm3, %v1058_v13, %v1062_v11  ;;  %v3740_v11 = vld [vmem:[%s4616_s13 + $0x2c] sm:$0x1] }
  0x64   : > { %4074 = vmatmul.mubr.msk.bf16.gmra.mrb[4].mxu0 %vm272_vm0, %v4417_v45  ;;  %v3687_v19 = vcombine.low %v1049_v16, %v1063_v17  ;;  %v3741_v45 = vld [vmem:[%s4616_s13 + $0x30] sm:$0xf]  ;;  %v1517_v16 = vshrl.u32 %v3743_v3, 16  ;;  %v1520_v17 = vshll.u32 %v3743_v3, 16 }
  0x65   : > { %4079 = vmatprep.mubr.msk.bf16.mxu0 %vm272_vm0, %v3684_v60  ;;  %v1503_v54 = vshrl.u32 %v3741_v45, 16  ;;  %v1506_v47 = vshll.u32 %v3741_v45, 16  ;;  %v1440_v60 = vrot.slane %v1439_v46, 4  ;;  %v1540_v46 = vshll.u32 %v3746_v40, 16 }
  0x66   : > { %v1522_v32 = vrot.slane %v1520_v17, 5 }
  0x67   : > { %v1505_v6 = vrot.slane %v1503_v54, 4  ;;  %v1508_v7 = vrot.slane %v1506_v47, 5  ;;  %v1445_v13 = vsel %vm4647_vm3, %v1440_v60, %v1444_v55  ;;  %v1542_v47 = vrot.slane %v1540_v46, 5  ;;  %v4430_v60 = vld [vmem:[%s5307_s3 + $0x18] sm:$0xff]  }
  0x69   : > { %v1509_v22 = vor.u32 %v1508_v7, %v1505_v6 }
  0x6c   : > { %4080 = vmatmul.mubr.msk.bf16.vlgmr.msra.gmra.mrb[0].mxu0 %vm272_vm0, %v3685_v2  ;;  %v1459_v2 = vsel %vm4647_vm3, %v1454_v61, %v1458_v56  ;;  %v4842_v61 = vld [vmem:[%s5307_s3] sm:$0xff]  }
  0x6d   : > { %4088 = vmatpush3.bf16.msra.mxu0 %v4719_v18  ;;  %4083 = vmatprep.mubr.msk.bf16.mxu0 %vm272_vm0, %v3686_v14  ;;  %v4422_v18 = vld [vmem:[%s4616_s13 + $0x28] ss:$8 sps:$4 sm:$0xff]   ;;  %v1467_v14 = vor.u32 %v1466_v59, %v1463_v58  ;;  %v3749_v27 = vcombine.low %v1445_v13, %v1459_v2  ;;  %v4523_v58 = vmov 0   ;;  %s4524_s13 = smov [#allocation3]  }
  0x6e   : > { %4097 = vmatprep.subr.bf16.mxu0 %v4420_v15  ;;  %1681 = vst.msk [vmem:[#allocation2 + $0x18] sm:$0xf] %vm1673_vm4, %v4523_v58  ;;  %1674 = vst.msk [vmem:[#allocation2] sm:$0xf] %vm1673_vm4, %v4523_v58  ;;  %v4429_v59 = vld [vmem:[%s5307_s3 + $0x10] sm:$0xff]   ;;  %s4463_s14 = sshll.u32 %s4524_s13, 4  ;;  %s4464_s14 = int_to_ptr.vmem [resolvable:$false] %s4463_s14 }
  0x6f   : > { %v1468_v28 = vrot.slane %v1467_v14, 4  ;;  %1682 = vst.msk [vmem:[#allocation2 + $0x1c] sm:$0x1] %vm1675_vm5, %v4523_v58  ;;  %1676 = vst.msk [vmem:[#allocation2 + $0x4] sm:$0x1] %vm1675_vm5, %v4523_v58  ;;  %4117 = vmatprep.subr.bf16.mxu1 %v4429_v59  ;;  %s4465_s15 = scalar_lea.vmem %s4464_s14, 1024  ;;  %p4466_p0 = scmp.lt.s32.totalorder %s5256_s8, %s4464_s14 }
  0x70   : > { %1677 = vst.msk [vmem:[#allocation2 + $0x8] sm:$0xf] %vm1673_vm4, %v4523_v58  ;;  %1679 = vst.msk [vmem:[#allocation2 + $0x10] sm:$0xf] %vm1673_vm4, %v4523_v58  ;;  %4118 = vmatpush3.bf16.msra.mxu1 %v4429_v59  ;;  %p4467_p1 = scmp.lt.s32.totalorder %s4465_s15, %s4459_s12 }
  0x71   : > { %v1473_v41 = vsel %vm4647_vm3, %v1468_v28, %v1472_v25  ;;  %1678 = vst.msk [vmem:[#allocation2 + $0xc] sm:$0x1] %vm1675_vm5, %v4523_v58  ;;  %1680 = vst.msk [vmem:[#allocation2 + $0x14] sm:$0x1] %vm1675_vm5, %v4523_v58  ;;  %4119 = vmatprep.subr.bf16.mxu1 %v4430_v60 }
  0x72   : > { %1683 = vst.msk [vmem:[#allocation2 + $0x20] sm:$0xf] %vm1673_vm4, %v4523_v58  ;;  %1685 = vst.msk [vmem:[#allocation2 + $0x28] sm:$0xf] %vm1673_vm4, %v4523_v58  ;;  %p4468_p2 = por %p4467_p1, %p4466_p0 }
  0x73   : > { %1684 = vst.msk [vmem:[#allocation2 + $0x24] sm:$0x1] %vm1675_vm5, %v4523_v58  ;;  %1686 = vst.msk [vmem:[#allocation2 + $0x2c] sm:$0x1] %vm1675_vm5, %v4523_v58 }
  0x74   : > { %4084 = vmatmul.mubr.msk.bf16.gmra.mrb[4].mxu0 %vm272_vm0, %v3687_v19  ;;  %v1531_v19 = vshrl.u32 %v3745_v8, 16  ;;  %1687 = vst.msk [vmem:[#allocation2 + $0x30] sm:$0xf] %vm1673_vm4, %v4523_v58  ;;  %1689 = vst.msk [vmem:[#allocation2 + $0x38] sm:$0xf] %vm1673_vm4, %v4523_v58  ;;  %4120 = vmatpush3.bf16.msra.mxu1 %v4430_v60  ;;  %p4469_p3 = pnand %p4468_p2, %p4462_p13 }
  0x75   : > { %4089 = vmatprep.mubr.msk.bf16.mxu0 %vm272_vm0, %v4419_v20  ;;  %v1534_v20 = vshll.u32 %v3745_v8, 16  ;;  %1688 = vst.msk [vmem:[#allocation2 + $0x34] sm:$0x1] %vm1675_vm5, %v4523_v58  ;;  %1690 = vst.msk [vmem:[#allocation2 + $0x3c] sm:$0x1] %vm1675_vm5, %v4523_v58  ;;  %4129 = vmatprep.subr.bf16.mxu1 %v4842_v61 }
  0x76   : > { %v1533_v33 = vrot.slane %v1531_v19, 4  ;;  %1691 = vst.msk [vmem:[#allocation2 + $0x40] sm:$0xf] %vm1673_vm4, %v4523_v58  ;;  %1693 = vst.msk [vmem:[#allocation2 + $0x48] sm:$0xf] %vm1673_vm4, %v4523_v58 }
  0x77   : > { %v1536_v34 = vrot.slane %v1534_v20, 5  ;;  %1692 = vst.msk [vmem:[#allocation2 + $0x44] sm:$0x1] %vm1675_vm5, %v4523_v58  ;;  %1694 = vst.msk [vmem:[#allocation2 + $0x4c] sm:$0x1] %vm1675_vm5, %v4523_v58 }
  0x78   : > { %v4858_v14 = vld [vmem:[#allocation2 + $0x4] sm:$0x1]  ;;  %v1826_v23 = vld [vmem:[#allocation2 + $0x18] sm:$0xf]  ;;  %v1829_v25 = vld [vmem:[#allocation2 + $0x1c] sm:$0x1] }
  0x79   : > { %v1537_v45 = vor.u32 %v1536_v34, %v1533_v33  ;;  %v1892_v17 = vshll.u32 %v4858_v14, 16  ;;  %v1820_v59 = vld [vmem:[#allocation2 + $0x10] sm:$0xf]  ;;  %v1823_v60 = vld [vmem:[#allocation2 + $0x14] sm:$0x1] }
  0x7b   : > { %v1538_v54 = vrot.slane %v1537_v45, 4 }
  0x7c   : > { %4090 = vmatmul.mubr.msk.bf16.vlgmr.msra.gmra.mrb[0].mxu0 %vm272_vm0, %v4421_v21  ;;  %v1495_v21 = vor.u32 %v1494_v5, %v1491_v4 }
  0x7d   : > { %4098 = vmatpush3.bf16.msra.mxu0 %v4420_v15  ;;  %4093 = vmatprep.mubr.msk.bf16.mxu0 %vm272_vm0, %v4422_v18  ;;  %v1481_v15 = vor.u32 %v1480_v0, %v1477_v63  ;;  %v1498_v18 = vshll.u32 %v3740_v11, 16  ;;  %v1543_v56 = vsel %vm4647_vm3, %v1538_v54, %v1542_v47  ;;  %v4850_v0 = vld [vmem:[#allocation2] sm:$0xf] }
  0x7e   : > { %4107 = vmatprep.subr.bf16.mxu0 %v4425_v24  ;;  %v1496_v35 = vrot.slane %v1495_v21, 4  ;;  %v1883_v9 = vshrl.u32 %v4850_v0, 16  ;;  %v1886_v10 = vshll.u32 %v4850_v0, 16 }
  0x7f   : > { %v1500_v36 = vrot.slane %v1498_v18, 5 }
  0x80   : > { %v4861_v21 = vrot.slane %v1883_v9, 4  ;;  %v4863_v18 = vrot.slane %v1886_v10, 5 }
  0x81   : > { %v1501_v48 = vsel %vm4647_vm3, %v1496_v35, %v1500_v36 }
  0x84   : > { %4094 = vmatmul.mubr.msk.bf16.gmra.mrb[4].mxu0 %vm272_vm0, %v4423_v29  ;;  %v1482_v29 = vrot.slane %v1481_v15, 4 }
  0x85   : > { %4099 = vmatprep.mubr.msk.bf16.mxu0 %vm272_vm0, %v4424_v37  ;;  %v1510_v37 = vrot.slane %v1509_v22, 4 }
  0x86   : > { %v1487_v43 = vsel %vm4647_vm3, %v1482_v29, %v1486_v30 }
  0x87   : > { %v1515_v49 = vsel %vm4647_vm3, %v1510_v37, %v1514_v39  ;;  %v3750_v50 = vcombine.low %v1473_v41, %v1487_v43  ;;  %v1817_v39 = vld [vmem:[#allocation2 + $0xc] sm:$0x1] }
  0x88   : > { %v3751_v52 = vcombine.low %v1501_v48, %v1515_v49  ;;  %v1832_v48 = vld [vmem:[#allocation2 + $0x20] sm:$0xf] }
  0x8c   : > { %4100 = vmatmul.mubr.msk.bf16.vlgmr.msra.gmra.mrb[0].mxu0 %vm272_vm0, %v4426_v51  ;;  %v1528_v51 = vrot.slane %v1526_v42, 5 }
  0x8d   : > { %4108 = vmatpush3.bf16.msra.mxu0 %v4425_v24  ;;  %4103 = vmatprep.mubr.msk.bf16.mxu0 %vm272_vm0, %v4427_v1  ;;  %v1519_v24 = vrot.slane %v1517_v16, 4 }
  0x8f   : > { %v1523_v44 = vor.u32 %v1522_v32, %v1519_v24  ;;  %v1811_v24 = vld [vmem:[#allocation2 + $0x8] sm:$0xf] }
  0x91   : > { %v1524_v53 = vrot.slane %v1523_v44, 4 }
  0x93   : > { %v1529_v55 = vsel %vm4647_vm3, %v1524_v53, %v1528_v51  ;;  %v1835_v53 = vld [vmem:[#allocation2 + $0x24] sm:$0x1] }
  0x94   : > { %4104 = vmatmul.mubr.msk.bf16.gmra.mrb[4].mxu0 %vm272_vm0, %v4428_v26  ;;  %v3752_v57 = vcombine.low %v1529_v55, %v1543_v56 }
  0x95   : > { %4109 = vmatprep.mubr.msk.bf16.mxu0 %vm272_vm0, %v3749_v27 }
  0x9c   : > { %4110 = vmatmul.mubr.msk.bf16.vlgmr.msra.gmra.mrb[0].mxu0 %vm272_vm0, %v3750_v50 }
  0x9d   : > { %4113 = vmatprep.mubr.msk.bf16.mxu0 %vm272_vm0, %v3751_v52 }
  0xa4   : > { %4114 = vmatmul.mubr.msk.bf16.gmra.mrb[4].mxu0 %vm272_vm0, %v3752_v57 }
 0x16f   : > { %v4111_v63 = vpop.f32.mrb[0].mxu0 }
 0x170   : > { %v1659_v1 = vadd.f32 %v4111_v63, %v4848_v62  ;;  %v1611_v3 = vpop.f32.mrb[1].mxu0 }
 0x171   : > { %v1657_v4 = vadd.f32 %v4848_v62, %v1611_v3  ;;  %v4112_v5 = vpop.f32.mrb[2].mxu0 }
 0x172   : > { %v1667_v6 = vmax.f32 %v1659_v1, 0.0  ;;  %v1660_v7 = vadd.f32 %v4112_v5, %v4848_v62  ;;  %v1614_v8 = vpop.f32.mrb[3].mxu0 }
 0x173   : > { %v1665_v11 = vmax.f32 %v1657_v4, 0.0  ;;  %v1658_v12 = vadd.f32 %v4848_v62, %v1614_v8 }
 0x174   : > { %v3921_v13 = vpack.c.bf16 %v1667_v6, %v1667_v6  ;;  %v1668_v2 = vmax.f32 %v1660_v7, 0.0 }
 0x175   : > { %v3919_v15 = vpack.c.bf16 %v1665_v11, %v1665_v11  ;;  %v1666_v16 = vmax.f32 %v1658_v12, 0.0 }
 0x176   : > { %v1744_v19 = vshrl.u32 %v3921_v13, 16  ;;  %v3922_v20 = vpack.c.bf16 %v1668_v2, %v1668_v2  ;;  %v1747_v22 = vshll.u32 %v3921_v13, 16 }
 0x177   : > { %v1728_v26 = vshrl.u32 %v3919_v15, 16  ;;  %v1731_v27 = vshll.u32 %v3919_v15, 16  ;;  %v3920_v28 = vpack.c.bf16 %v1666_v16, %v1666_v16  ;;  %v4115_v29 = vpop.f32.mrb[4].mxu0  ;;  %v1850_v15 = vld [vmem:[#allocation2 + $0x38] sm:$0xf] }
 0x178   : > { %v1746_v30 = vrot.slane %v1744_v19, 7  ;;  %v1752_v32 = vshrl.u32 %v3922_v20, 16  ;;  %v1755_v33 = vshll.u32 %v3922_v20, 16  ;;  %v1663_v34 = vadd.f32 %v4115_v29, %v4848_v62  ;;  %v1627_v35 = vpop.f32.mrb[5].mxu0 }
 0x179   : > { %v1730_v37 = vrot.slane %v1728_v26, 7  ;;  %v1736_v40 = vshrl.u32 %v3920_v28, 16  ;;  %v1739_v41 = vshll.u32 %v3920_v28, 16  ;;  %v1661_v42 = vadd.f32 %v4848_v62, %v1627_v35  ;;  %v4116_v43 = vpop.f32.mrb[6].mxu0  ;;  %v1841_v28 = vld [vmem:[#allocation2 + $0x2c] sm:$0x1] }
 0x17a   : > { %v1749_v44 = vor.u32 %v1747_v22, %v1746_v30  ;;  %v1750_v45 = vrot.slane %v1746_v30, 4  ;;  %v1754_v46 = vrot.slane %v1752_v32, 7  ;;  %v1671_v49 = vmax.f32 %v1663_v34, 0.0  ;;  %v1630_v50 = vpop.f32.mrb[7].mxu0 }
 0x17b   : > { %v1733_v51 = vor.u32 %v1731_v27, %v1730_v37  ;;  %v1734_v52 = vrot.slane %v1730_v37, 4  ;;  %v1738_v54 = vrot.slane %v1736_v40, 7  ;;  %v1669_v47 = vmax.f32 %v1661_v42, 0.0  ;;  %v1838_v27 = vld [vmem:[#allocation2 + $0x28] sm:$0xf] }
 0x17c   : > { %v1827_v55 = vsel %vm4867_vm8, %v1749_v44, %v1826_v23  ;;  %v1830_v56 = vsel %vm4874_vm9, %v1750_v45, %v1829_v25  ;;  %v1757_v57 = vor.u32 %v1755_v33, %v1754_v46  ;;  %v1758_v58 = vrot.slane %v1754_v46, 4  ;;  %v1853_v23 = vld [vmem:[#allocation2 + $0x3c] sm:$0x1]  ;;  %v1856_v44 = vld [vmem:[#allocation2 + $0x40] sm:$0xf] }
 0x17d   : > { %1828 = vst [vmem:[#allocation2 + $0x18] sm:$0xf] %v1827_v55  ;;  %1831 = vst [vmem:[#allocation2 + $0x1c] sm:$0x1] %v1830_v56  ;;  %v1812_v63 = vsel %vm4867_vm8, %v1733_v51, %v1811_v24  ;;  %v1818_v1 = vsel %vm4874_vm9, %v1734_v52, %v1817_v39  ;;  %v1741_v3 = vor.u32 %v1739_v41, %v1738_v54  ;;  %v1742_v4 = vrot.slane %v1738_v54, 4 }
 0x17e   : > { %1813 = vst [vmem:[#allocation2 + $0x8] sm:$0xf] %v1812_v63  ;;  %1819 = vst [vmem:[#allocation2 + $0xc] sm:$0x1] %v1818_v1  ;;  %v1833_v5 = vsel %vm4867_vm8, %v1757_v57, %v1832_v48  ;;  %v1836_v6 = vsel %vm4874_vm9, %v1758_v58, %v1835_v53  ;;  %v3925_v7 = vpack.c.bf16 %v1671_v49, %v1671_v49  ;;  %v1859_v45 = vld [vmem:[#allocation2 + $0x44] sm:$0x1] }
 0x17f   : > { %v3923_v8 = vpack.c.bf16 %v1669_v47, %v1669_v47  ;;  %1834 = vst [vmem:[#allocation2 + $0x20] sm:$0xf] %v1833_v5  ;;  %1837 = vst [vmem:[#allocation2 + $0x24] sm:$0x1] %v1836_v6  ;;  %v1821_v9 = vsel %vm4867_vm8, %v1741_v3, %v1820_v59  ;;  %v1824_v10 = vsel %vm4874_vm9, %v1742_v4, %v1823_v60  ;;  %v1844_v46 = vld [vmem:[#allocation2 + $0x30] sm:$0xf] }
 0x180   : > { %v1664_v11 = vadd.f32 %v4116_v43, %v4848_v62  ;;  %v1662_v12 = vadd.f32 %v4848_v62, %v1630_v50  ;;  %1822 = vst [vmem:[#allocation2 + $0x10] sm:$0xf] %v1821_v9  ;;  %1825 = vst [vmem:[#allocation2 + $0x14] sm:$0x1] %v1824_v10  ;;  %v1776_v13 = vshrl.u32 %v3925_v7, 16  ;;  %v1779_v22 = vshll.u32 %v3925_v7, 16 }
 0x181   : > { %v1760_v2 = vshrl.u32 %v3923_v8, 16  ;;  %v1763_v26 = vshll.u32 %v3923_v8, 16  ;;  %v1889_v24 = vor.u32 %v4863_v18, %v4861_v21  ;;  %v4901_v62 = vrot.slane %v1892_v17, 5  ;;  %v1847_v54 = vld [vmem:[#allocation2 + $0x34] sm:$0x1] }
 0x182   : > { %v1672_v16 = vmax.f32 %v1664_v11, 0.0  ;;  %v1670_v19 = vmax.f32 %v1662_v12, 0.0  ;;  %v1778_v20 = vrot.slane %v1776_v13, 7 }
 0x183   : > { %v1762_v25 = vrot.slane %v1760_v2, 7  ;;  %v1890_v47 = vrot.slane %v1889_v24, 4 }
 0x184   : > { %v3926_v29 = vpack.c.bf16 %v1672_v16, %v1672_v16  ;;  %v3924_v30 = vpack.c.bf16 %v1670_v19, %v1670_v19  ;;  %v1781_v32 = vor.u32 %v1779_v22, %v1778_v20  ;;  %v1782_v33 = vrot.slane %v1778_v20, 4  ;;  %v4922_v1 = vld [vmem:[#allocation2 + $0x18] sm:$0xf]  ;;  %v4934_v11 = vld [vmem:[#allocation2 + $0x1c] sm:$0x1] }
 0x185   : > { %v1765_v34 = vor.u32 %v1763_v26, %v1762_v25  ;;  %v1766_v35 = vrot.slane %v1762_v25, 4  ;;  %v4903_v42 = vld [vmem:[#allocation2 + $0x8] sm:$0xf]  ;;  %v4913_v48 = vld [vmem:[#allocation2 + $0xc] sm:$0x1]  ;;  %v1895_v31 = vsel %vm4647_vm3, %v1890_v47, %v4901_v62  ;;  %v1928_v19 = vshll.u32 %v4922_v1, 16 }
 0x186   : > { %v1784_v37 = vshrl.u32 %v3926_v29, 16  ;;  %v1787_v39 = vshll.u32 %v3926_v29, 16  ;;  %v1768_v40 = vshrl.u32 %v3924_v30, 16  ;;  %v1771_v41 = vshll.u32 %v3924_v30, 16  ;;  %v4938_v16 = vld [vmem:[#allocation2 + $0x20] sm:$0xf] }
 0x187   : > { %v1851_v43 = vsel %vm4867_vm8, %v1781_v32, %v1850_v15  ;;  %v1854_v21 = vsel %vm4874_vm9, %v1782_v33, %v1853_v23  ;;  %v1839_v17 = vsel %vm4867_vm8, %v1765_v34, %v1838_v27  ;;  %v1842_v18 = vsel %vm4874_vm9, %v1766_v35, %v1841_v28  ;;  %v4917_v53 = vld [vmem:[#allocation2 + $0x10] sm:$0xf]  ;;  %v4924_v3 = vld [vmem:[#allocation2 + $0x14] sm:$0x1]  ;;  %v4951_v32 = vld [vmem:[#allocation2 + $0x24] sm:$0x1] }
 0x188   : > { %1852 = vst [vmem:[#allocation2 + $0x38] sm:$0xf] %v1851_v43  ;;  %1855 = vst [vmem:[#allocation2 + $0x3c] sm:$0x1] %v1854_v21  ;;  %v1786_v49 = vrot.slane %v1784_v37, 7  ;;  %v1770_v50 = vrot.slane %v1768_v40, 7 }
 0x189   : > { %1840 = vst [vmem:[#allocation2 + $0x28] sm:$0xf] %v1839_v17  ;;  %1843 = vst [vmem:[#allocation2 + $0x2c] sm:$0x1] %v1842_v18  ;;  %v1897_v51 = vshrl.u32 %v4903_v42, 16  ;;  %v1900_v52 = vshll.u32 %v4903_v42, 16 }
 0x18a   : > { %v1906_v55 = vshll.u32 %v4913_v48, 16  ;;  %v1911_v56 = vshrl.u32 %v4917_v53, 16  ;;  %v1914_v57 = vshll.u32 %v4917_v53, 16  ;;  %v1789_v58 = vor.u32 %v1787_v39, %v1786_v49 }
 0x18b   : > { %v1790_v59 = vrot.slane %v1786_v49, 4  ;;  %v1773_v60 = vor.u32 %v1771_v41, %v1770_v50  ;;  %v1774_v63 = vrot.slane %v1770_v50, 4  ;;  %v1899_v4 = vrot.slane %v1897_v51, 4 }
 0x18c   : > { %v1902_v5 = vrot.slane %v1900_v52, 5  ;;  %v1913_v6 = vrot.slane %v1911_v56, 4  ;;  %v1857_v7 = vsel %vm4867_vm8, %v1789_v58, %v1856_v44  ;;  %v1916_v13 = vrot.slane %v1914_v57, 5  ;;  %v4432_v57 = vld [vmem:[%s5307_s3 + $0x8] sm:$0xff]  }
 0x18d   : > { %v1860_v8 = vsel %vm4874_vm9, %v1790_v59, %v1859_v45  ;;  %v1845_v9 = vsel %vm4867_vm8, %v1773_v60, %v1844_v46  ;;  %v1848_v10 = vsel %vm4874_vm9, %v1774_v63, %v1847_v54  ;;  %1858 = vst [vmem:[#allocation2 + $0x40] sm:$0xf] %v1857_v7  ;;  %v1920_v2 = vshll.u32 %v4924_v3, 16 }
 0x18e   : > { %1861 = vst [vmem:[#allocation2 + $0x44] sm:$0x1] %v1860_v8  ;;  %1846 = vst [vmem:[#allocation2 + $0x30] sm:$0xf] %v1845_v9  ;;  %v1903_v12 = vor.u32 %v1902_v5, %v1899_v4  ;;  %v1925_v15 = vshrl.u32 %v4922_v1, 16  ;;  %v1908_v36 = vrot.slane %v1906_v55, 5  ;;  %v1917_v22 = vor.u32 %v1916_v13, %v1913_v6 }
 0x18f   : > { %1849 = vst [vmem:[#allocation2 + $0x34] sm:$0x1] %v1848_v10  ;;  %v1934_v25 = vshll.u32 %v4934_v11, 16  ;;  %v1930_v27 = vrot.slane %v1928_v19, 5  ;;  %v1939_v28 = vshrl.u32 %v4938_v16, 16  ;;  %v1942_v29 = vshll.u32 %v4938_v16, 16 }
 0x190   : > { %v1904_v20 = vrot.slane %v1903_v12, 4  ;;  %v1927_v23 = vrot.slane %v1925_v15, 4  ;;  %v4945_v26 = vld [vmem:[#allocation2 + $0x28] sm:$0xf]  ;;  %v1918_v24 = vrot.slane %v1917_v22, 4  ;;  %v1922_v62 = vrot.slane %v1920_v2, 5 }
 0x191   : > { %v1953_v33 = vshrl.u32 %v4945_v26, 16  ;;  %v4954_v37 = vld [vmem:[#allocation2 + $0x2c] sm:$0x1]  ;;  %v1941_v39 = vrot.slane %v1939_v28, 4  ;;  %v1944_v40 = vrot.slane %v1942_v29, 5  ;;  %v1936_v41 = vrot.slane %v1934_v25, 5 }
 0x192   : > { %v1909_v30 = vsel %vm4647_vm3, %v1904_v20, %v1908_v36  ;;  %v1931_v35 = vor.u32 %v1930_v27, %v1927_v23  ;;  %v1956_v21 = vshll.u32 %v4945_v26, 16  ;;  %v4957_v17 = vld [vmem:[#allocation2 + $0x38] sm:$0xf]  ;;  %v1923_v18 = vsel %vm4647_vm3, %v1918_v24, %v1922_v62  ;;  %v4976_v63 = vld [vmem:[#allocation2 + $0x3c] sm:$0x1]  ;;  %v4434_v20 = vld [vmem:[%s5307_s3 + $0x20] sm:$0xff]  }
 0x193   : > { %v3771_v34 = vcombine.low %v1895_v31, %v1909_v30  ;;  %v1955_v43 = vrot.slane %v1953_v33, 4  ;;  %v1945_v45 = vor.u32 %v1944_v40, %v1941_v39  ;;  %v1948_v46 = vshll.u32 %v4951_v32, 16  ;;  %v2210_v62 = vld [vmem:[#allocation2] sm:$0xe]  ;;  %v2211_v33 = vld [vmem:[#allocation2 + $0x8] sm:$0xe] }
 0x194   : > { %v1932_v44 = vrot.slane %v1931_v35, 4  ;;  %v1958_v50 = vrot.slane %v1956_v21, 5  ;;  %v1962_v51 = vshll.u32 %v4954_v37, 16  ;;  %v1981_v58 = vshrl.u32 %v4957_v17, 16  ;;  %v4437_v35 = vld [vmem:[%s5307_s3 + $0x28] sm:$0xff]  }
 0x195   : > { %4121 = vmatprep.mubr.msk.bf16.mxu1 %vm2023_vm10, %v3771_v34  ;;  %v4963_v49 = vld [vmem:[#allocation2 + $0x30] sm:$0xf]  ;;  %v1946_v56 = vrot.slane %v1945_v45, 4  ;;  %v1984_v8 = vshll.u32 %v4957_v17, 16  ;;  %v1950_v9 = vrot.slane %v1948_v46, 5  ;;  %v1990_v15 = vshll.u32 %v4976_v63, 16 }
 0x196   : > { %v4966_v52 = vld [vmem:[#allocation2 + $0x34] sm:$0x1]  ;;  %v1967_v54 = vshrl.u32 %v4963_v49, 16  ;;  %v1970_v47 = vshll.u32 %v4963_v49, 16  ;;  %v1937_v55 = vsel %vm4647_vm3, %v1932_v44, %v1936_v41  ;;  %v1959_v60 = vor.u32 %v1958_v50, %v1955_v43  ;;  %v2213_v21 = vld [vmem:[#allocation2 + $0x18] sm:$0xe] }
 0x197   : > { %v3772_v59 = vcombine.low %v1923_v18, %v1937_v55  ;;  %v1976_v6 = vshll.u32 %v4966_v52, 16  ;;  %v1983_v7 = vrot.slane %v1981_v58, 4  ;;  %v1964_v12 = vrot.slane %v1962_v51, 5  ;;  %v2214_v46 = vld [vmem:[#allocation2 + $0x20] sm:$0xe] }
 0x198   : > { %v1969_v4 = vrot.slane %v1967_v54, 4  ;;  %v1972_v5 = vrot.slane %v1970_v47, 5  ;;  %v1960_v10 = vrot.slane %v1959_v60, 4  ;;  %v1986_v2 = vrot.slane %v1984_v8, 5  ;;  %v4442_v8 = vld [vmem:[%s5307_s3 + $0x40] sm:$0xff]  }
 0x199   : > { %4122 = vmatmul.mubr.msk.bf16.vlgmr.msra.gmra.mrb[0].mxu1 %vm2023_vm10, %v3772_v59  ;;  %v1951_v31 = vsel %vm4647_vm3, %v1946_v56, %v1950_v9  ;;  %v1978_v23 = vrot.slane %v1976_v6, 5  ;;  %v1992_v28 = vrot.slane %v1990_v15, 5  ;;  %v3781_v24 = vcombine.low %v4850_v0, %v4903_v42  ;;  %v2216_v56 = vld [vmem:[#allocation2 + $0x30] sm:$0xe]  ;;  %v2217_v59 = vld [vmem:[#allocation2 + $0x38] sm:$0xe] }
 0x19a   : > { %v1973_v13 = vor.u32 %v1972_v5, %v1969_v4  ;;  %4130 = vmatpush3.bf16.msra.mxu1 %v4842_v61  ;;  %v1965_v36 = vsel %vm4647_vm3, %v1960_v10, %v1964_v12  ;;  %v1987_v25 = vor.u32 %v1986_v2, %v1983_v7  ;;  %v3782_v34 = vcombine.low %v4917_v53, %v4922_v1  ;;  %v4439_v1 = vld [vmem:[%s5307_s3 + $0x30] sm:$0xff]   ;;  %v2513_v10 = vld [vmem:[#allocation2 + $0x8] sm:$0xf] }
 0x19b   : > { %4131 = vmatprep.subr.bf16.mxu1 %v4432_v57  ;;  %v3773_v22 = vcombine.low %v1951_v31, %v1965_v36  ;;  %v3783_v39 = vcombine.low %v4938_v16, %v4945_v26  ;;  %v2239_v0 = vrot.slane %v4858_v14, 5  ;;  %v2243_v42 = vrot.slane %v4913_v48, 5  ;;  %v2212_v16 = vld [vmem:[#allocation2 + $0x10] sm:$0xe]  ;;  %v2215_v26 = vld [vmem:[#allocation2 + $0x28] sm:$0xe] }
 0x19c   : > { %v1974_v19 = vrot.slane %v1973_v13, 4  ;;  %v1988_v27 = vrot.slane %v1987_v25, 4  ;;  %v3791_v40 = vrot.slane %v2210_v62, 9  ;;  %v3792_v41 = vrot.slane %v2211_v33, 9  ;;  %v2515_v7 = vld [vmem:[#allocation2 + $0x10] sm:$0xf] }
 0x19d   : > { %4125 = vmatprep.mubr.msk.bf16.mxu1 %vm2023_vm10, %v3773_v22  ;;  %v3784_v43 = vcombine.low %v4963_v49, %v4957_v17  ;;  %v2247_v18 = vrot.slane %v4924_v3, 5  ;;  %v3793_v45 = vrot.slane %v2212_v16, 9  ;;  %v3796_v50 = vrot.slane %v2215_v26, 9  ;;  %v4441_v31 = vld [vmem:[#allocation2 + $0x8] ss:$8 sps:$4 sm:$0xff]  }
 0x19e   : > { %v1979_v61 = vsel %vm4647_vm3, %v1974_v19, %v1978_v23  ;;  %4132 = vmatpush3.bf16.msra.mxu1 %v4432_v57  ;;  %v1993_v29 = vsel %vm4647_vm3, %v1988_v27, %v1992_v28  ;;  %v2240_v14 = vsel %vm5010_vm13, %v3791_v40, %v2239_v0  ;;  %v2244_v48 = vsel %vm5010_vm13, %v3792_v41, %v2243_v42  ;;  %v2523_v22 = vld [vmem:[#allocation2 + $0x30] sm:$0xf]  ;;  %v5053_v27 = vld [vmem:[#allocation2 + $0x14] sm:$0x1]  ;;  %v4443_v0 = vld [vmem:[#allocation2 + $0x18] ss:$8 sps:$4 sm:$0xff]  }
 0x19f   : > { %4141 = vmatprep.subr.bf16.mxu1 %v4434_v20  ;;  %v3774_v30 = vcombine.low %v1979_v61, %v1993_v29  ;;  %v3803_v44 = vcombine.low %v2240_v14, %v2244_v48  ;;  %v2259_v51 = vrot.slane %v4954_v37, 5  ;;  %v2251_v54 = vrot.slane %v4934_v11, 5  ;;  %v4440_v37 = vld [vmem:[%s5307_s3 + $0x38] sm:$0xff]   ;;  %v4445_v42 = vld [vmem:[%s5307_s3 + $0x48] sm:$0xff]  }
 0x1a0   : > { %v3794_v47 = vrot.slane %v2213_v21, 9  ;;  %v3795_v55 = vrot.slane %v2214_v46, 9  ;;  %v2255_v17 = vrot.slane %v4951_v32, 5  ;;  %v2248_v49 = vsel %vm5010_vm13, %v3793_v45, %v2247_v18  ;;  %v2517_v61 = vld [vmem:[#allocation2 + $0x18] sm:$0xf]  ;;  %v5067_v46 = vld [vmem:[%s5307_s3 + $0x50] sm:$0xff]  }
 0x1a1   : > { %4126 = vmatmul.mubr.msk.bf16.gmra.mrb[4].mxu1 %vm2023_vm10, %v3774_v30  ;;  %v2260_v3 = vsel %vm5010_vm13, %v3796_v50, %v2259_v51  ;;  %v3797_v60 = vrot.slane %v2216_v56, 9  ;;  %v2263_v4 = vrot.slane %v4966_v52, 5  ;;  %v3798_v5 = vrot.slane %v2217_v59, 9  ;;  %v2521_v30 = vld [vmem:[#allocation2 + $0x28] sm:$0xf] }
 0x1a2   : > { %4133 = vmatprep.mubr.msk.bf16.mxu1 %vm2023_vm10, %v3781_v24  ;;  %v2252_v57 = vsel %vm5010_vm13, %v3794_v47, %v2251_v54  ;;  %v2256_v11 = vsel %vm5010_vm13, %v3795_v55, %v2255_v17  ;;  %v2267_v6 = vrot.slane %v4976_v63, 5  ;;  %v2544_v12 = vshrl.u32 %v2515_v7, 16  ;;  %v4444_v48 = vld [vmem:[#allocation2 + $0x28] ss:$8 sps:$4 sm:$0xff]   ;;  %v2527_v45 = vld [vmem:[#allocation2 + $0x40] sm:$0xf] }
 0x1a3   : > { %v3804_v58 = vcombine.low %v2248_v49, %v2252_v57  ;;  %v3805_v32 = vcombine.low %v2256_v11, %v2260_v3  ;;  %v2264_v9 = vsel %vm5010_vm13, %v3797_v60, %v2263_v4  ;;  %v2547_v52 = vshll.u32 %v2515_v7, 16  ;;  %v5069_v50 = vld [vmem:[#allocation2 + $0x24] sm:$0x1]  ;;  %v2525_v3 = vld [vmem:[#allocation2 + $0x38] sm:$0xf] }
 0x1a4   : > { %v2268_v13 = vsel %vm5010_vm13, %v3798_v5, %v2267_v6  ;;  %v2530_v15 = vshrl.u32 %v2513_v10, 16  ;;  %v2533_v63 = vshll.u32 %v2513_v10, 16  ;;  %v2546_v36 = vrot.slane %v2544_v12, 4  ;;  %v5071_v56 = vld [vmem:[#allocation2 + $0x1c] sm:$0x1] }
 0x1a5   : > { %v3806_v2 = vcombine.low %v2264_v9, %v2268_v13  ;;  %v2549_v19 = vrot.slane %v2547_v52, 5  ;;  %v2600_v62 = vshrl.u32 %v2523_v22, 16  ;;  %v2603_v33 = vshll.u32 %v2523_v22, 16  ;;  %v5078_v6 = vld [vmem:[#allocation2 + $0x2c] sm:$0x1] }
 0x1a6   : > { %v2532_v23 = vrot.slane %v2530_v15, 4  ;;  %v2535_v25 = vrot.slane %v2533_v63, 5  ;;  %v2553_v41 = vshll.u32 %v5053_v27, 16  ;;  %v2589_v14 = vshll.u32 %v2521_v30, 16  ;;  %v4446_v9 = vld [vmem:[#allocation2 + $0x38] ss:$8 sps:$4 sm:$0xff]  }
 0x1a7   : > { %v2550_v24 = vor.u32 %v2549_v19, %v2546_v36  ;;  %v2602_v18 = vrot.slane %v2600_v62, 4  ;;  %v2628_v11 = vshrl.u32 %v2527_v45, 16  ;;  %v2581_v5 = vshll.u32 %v5069_v50, 16 }
 0x1a8   : > { %v2536_v40 = vor.u32 %v2535_v25, %v2532_v23  ;;  %v2555_v55 = vrot.slane %v2553_v41, 5  ;;  %v2591_v49 = vrot.slane %v2589_v14, 5  ;;  %v2614_v7 = vshrl.u32 %v2525_v3, 16  ;;  %v2756_v41 = vld [vmem:[#allocation2 + $0x10] sm:$0xe] }
 0x1a9   : > { %4134 = vmatmul.mubr.msk.bf16.vlgmr.msra.gmra.mrb[0].mxu1 %vm2023_vm10, %v3782_v34  ;;  %v5055_v34 = vld [vmem:[#allocation2 + $0xc] sm:$0x1]  ;;  %v2551_v21 = vrot.slane %v2550_v24, 4  ;;  %v2567_v12 = vshll.u32 %v5071_v56, 16  ;;  %v2630_v63 = vrot.slane %v2628_v11, 4  ;;  %v2595_v36 = vshll.u32 %v5078_v6, 16 }
 0x1aa   : > { %4142 = vmatpush3.bf16.msra.mxu1 %v4434_v20  ;;  %4137 = vmatprep.mubr.msk.bf16.mxu1 %vm2023_vm10, %v3783_v39  ;;  %v2519_v20 = vld [vmem:[#allocation2 + $0x20] sm:$0xf]  ;;  %v2561_v39 = vshll.u32 %v2517_v61, 16  ;;  %v2537_v47 = vrot.slane %v2536_v40, 4  ;;  %v2583_v22 = vrot.slane %v2581_v5, 5  ;;  %v2616_v23 = vrot.slane %v2614_v7, 4 }
 0x1ab   : > { %4143 = vmatprep.subr.bf16.mxu1 %v4437_v35  ;;  %v2572_v28 = vshrl.u32 %v2519_v20, 16  ;;  %v2575_v29 = vshll.u32 %v2519_v20, 16 }
 0x1ac   : > { %v2563_v54 = vrot.slane %v2561_v39, 5  ;;  %v5094_v39 = vld [vmem:[#allocation2 + $0x3c] sm:$0x1] }
 0x1ad   : > { %v2574_v16 = vrot.slane %v2572_v28, 4  ;;  %v2577_v26 = vrot.slane %v2575_v29, 5  ;;  %v5088_v29 = vld [vmem:[#allocation2 + $0x44] sm:$0x1] }
 0x1ae   : > { %4144 = vmatpush3.bf16.msra.mxu1 %v4437_v35  ;;  %v2558_v35 = vshrl.u32 %v2517_v61, 16  ;;  %v2637_v40 = vshll.u32 %v5088_v29, 16 }
 0x1af   : > { %4153 = vmatprep.subr.bf16.mxu1 %v4439_v1  ;;  %v2578_v57 = vor.u32 %v2577_v26, %v2574_v16  ;;  %v2623_v26 = vshll.u32 %v5094_v39, 16 }
 0x1b0   : > { %v2560_v51 = vrot.slane %v2558_v35, 4 }
 0x1b1   : > { %4138 = vmatmul.mubr.msk.bf16.gmra.mrb[4].mxu1 %vm2023_vm10, %v3784_v43  ;;  %v2539_v43 = vshll.u32 %v5055_v34, 16  ;;  %v2579_v15 = vrot.slane %v2578_v57, 4  ;;  %v2760_v57 = vld [vmem:[#allocation2 + $0x30] sm:$0xe] }
 0x1b2   : > { %4145 = vmatprep.mubr.msk.bf16.mxu1 %vm2023_vm10, %v3803_v44  ;;  %v2605_v44 = vrot.slane %v2603_v33, 5  ;;  %v2564_v4 = vor.u32 %v2563_v54, %v2560_v51  ;;  %v2597_v33 = vrot.slane %v2595_v36, 5  ;;  %v2639_v51 = vrot.slane %v2637_v40, 5  ;;  %v3064_v40 = vld [vmem:[#allocation2 + $0x30] sm:$0xf] }
 0x1b3   : > { %v2541_v59 = vrot.slane %v2539_v43, 5  ;;  %v2584_v24 = vsel %vm4647_vm3, %v2579_v15, %v2583_v22  ;;  %v3846_v5 = vrot.slane %v2760_v57, 9  ;;  %v2809_v36 = vrot.slane %v5088_v29, 5  ;;  %v3056_v22 = vld [vmem:[#allocation2 + $0x10] sm:$0xf] }
 0x1b4   : > { %v2606_v60 = vor.u32 %v2605_v44, %v2602_v18  ;;  %v2565_v20 = vrot.slane %v2564_v4, 4  ;;  %v3842_v18 = vrot.slane %v2756_v41, 9  ;;  %v2785_v44 = vrot.slane %v5053_v27, 5  ;;  %v2759_v4 = vld [vmem:[#allocation2 + $0x28] sm:$0xe] }
 0x1b5   : > { %v2542_v10 = vsel %vm4647_vm3, %v2537_v47, %v2541_v59  ;;  %v2781_v47 = vrot.slane %v5055_v34, 5  ;;  %v3076_v29 = vshll.u32 %v3056_v22, 16  ;;  %v4454_v57 = vld [vmem:[#allocation2 + $0x30] ss:$8 sps:$4 sm:$0xff]  }
 0x1b6   : > { %v2607_v19 = vrot.slane %v2606_v60, 4  ;;  %v2786_v27 = vsel %vm5010_vm13, %v3842_v18, %v2785_v44  ;;  %v2793_v60 = vrot.slane %v5069_v50, 5  ;;  %v3129_v18 = vshrl.u32 %v3064_v40, 16 }
 0x1b7   : > { %v3132_v44 = vshll.u32 %v3064_v40, 16 }
 0x1b9   : > { %4146 = vmatmul.mubr.msk.bf16.vlgmr.msra.gmra.mrb[0].mxu1 %vm2023_vm10, %v3804_v58  ;;  %v5073_v58 = vld [vmem:[#allocation2 + $0x34] sm:$0x1] }
 0x1ba   : > { %4154 = vmatpush3.bf16.msra.mxu1 %v4439_v1  ;;  %4149 = vmatprep.mubr.msk.bf16.mxu1 %vm2023_vm10, %v3805_v32  ;;  %v2586_v1 = vshrl.u32 %v2521_v30, 16  ;;  %v2556_v32 = vsel %vm4647_vm3, %v2551_v21, %v2555_v55  ;;  %v2609_v13 = vshll.u32 %v5073_v58, 16  ;;  %v2569_v30 = vrot.slane %v2567_v12, 5  ;;  %v2755_v21 = vld [vmem:[#allocation2 + $0x8] sm:$0xe]  ;;  %v4449_v55 = vld [vmem:[%s5307_s3 + $0x60] sm:$0xff]  }
 0x1bb   : > { %4155 = vmatprep.subr.bf16.mxu1 %v4440_v37  ;;  %v3841_v54 = vrot.slane %v2755_v21, 9  ;;  %v2801_v7 = vrot.slane %v5073_v58, 5  ;;  %v2797_v12 = vrot.slane %v5078_v6, 5 }
 0x1bc   : > { %v2588_v17 = vrot.slane %v2586_v1, 4  ;;  %v2611_v28 = vrot.slane %v2609_v13, 5  ;;  %v2762_v13 = vld [vmem:[#allocation2 + $0x40] sm:$0xe] }
 0x1bd   : > { %v2782_v34 = vsel %vm5010_vm13, %v3841_v54, %v2781_v47  ;;  %v2802_v50 = vsel %vm5010_vm13, %v3846_v5, %v2801_v7  ;;  %v3070_v47 = vld [vmem:[#allocation2 + $0x48] sm:$0xf]  ;;  %v5165_v5 = vld [vmem:[%s5307_s3 + $0x80] sm:$0xff]  }
 0x1be   : > { %4156 = vmatpush3.bf16.msra.mxu1 %v4440_v37  ;;  %v2631_v37 = vshll.u32 %v2527_v45, 16  ;;  %v2592_v52 = vor.u32 %v2591_v49, %v2588_v17  ;;  %v2612_v35 = vsel %vm4647_vm3, %v2607_v19, %v2611_v28  ;;  %v2625_v17 = vrot.slane %v2623_v26, 5 }
 0x1bf   : > { %4165 = vmatprep.subr.bf16.mxu1 %v4442_v8  ;;  %v3853_v59 = vcombine.low %v2782_v34, %v2786_v27  ;;  %v3073_v28 = vshrl.u32 %v3056_v22, 16 }
 0x1c0   : > { %v2593_v61 = vrot.slane %v2592_v52, 4 }
 0x1c1   : > { %4150 = vmatmul.mubr.msk.bf16.gmra.mrb[4].mxu1 %vm2023_vm10, %v3806_v2  ;;  %v3831_v2 = vcombine.low %v2542_v10, %v2556_v32  ;;  %v3845_v10 = vrot.slane %v2759_v4, 9  ;;  %v3068_v4 = vld [vmem:[#allocation2 + $0x40] sm:$0xf] }
 0x1c2   : > { %4157 = vmatprep.mubr.msk.bf16.mxu1 %vm2023_vm10, %v4441_v31  ;;  %v2633_v31 = vrot.slane %v2631_v37, 5  ;;  %v2598_v14 = vsel %vm4647_vm3, %v2593_v61, %v2597_v33  ;;  %v2757_v37 = vld [vmem:[#allocation2 + $0x18] sm:$0xe] }
 0x1c3   : > { %v3833_v16 = vcombine.low %v2598_v14, %v2612_v35  ;;  %v2798_v58 = vsel %vm5010_vm13, %v3845_v10, %v2797_v12  ;;  %v3058_v61 = vld [vmem:[#allocation2 + $0x18] sm:$0xf]  ;;  %v3060_v14 = vld [vmem:[#allocation2 + $0x20] sm:$0xf]  ;;  %v3174_v10 = vshll.u32 %v3070_v47, 16 }
 0x1c4   : > { %v2634_v62 = vor.u32 %v2633_v31, %v2630_v63  ;;  %v2761_v63 = vld [vmem:[#allocation2 + $0x38] sm:$0xe]  ;;  %v3855_v6 = vcombine.low %v2798_v58, %v2802_v50  ;;  %v3848_v31 = vrot.slane %v2762_v13, 9  ;;  %v3090_v33 = vshll.u32 %v3058_v61, 16  ;;  %v5167_v50 = vld [vmem:[#allocation2 + $0x2c] sm:$0x1] }
 0x1c5   : > { %v3847_v19 = vrot.slane %v2761_v63, 9  ;;  %v4451_v35 = vld [vmem:[#allocation2 + $0x10] ss:$8 sps:$4 sm:$0xff]   ;;  %v3104_v54 = vshll.u32 %v3060_v14, 16  ;;  %v3157_v63 = vshrl.u32 %v3068_v4, 16  ;;  %v3124_v22 = vshll.u32 %v5167_v50, 16 }
 0x1c6   : > { %v2635_v43 = vrot.slane %v2634_v62, 4  ;;  %v3087_v62 = vshrl.u32 %v3058_v61, 16  ;;  %v3176_v61 = vrot.slane %v3174_v10, 5 }
 0x1c8   : > { %v2640_v49 = vsel %vm4647_vm3, %v2635_v43, %v2639_v51  ;;  %v3089_v41 = vrot.slane %v3087_v62, 4  ;;  %v3066_v43 = vld [vmem:[#allocation2 + $0x38] sm:$0xf]  ;;  %v3101_v51 = vshrl.u32 %v3060_v14, 16 }
 0x1c9   : > { %4158 = vmatmul.mubr.msk.bf16.vlgmr.msra.gmra.mrb[0].mxu1 %vm2023_vm10, %v4443_v0  ;;  %v2570_v0 = vsel %vm4647_vm3, %v2565_v20, %v2569_v30  ;;  %v2805_v20 = vrot.slane %v5094_v39, 5  ;;  %v3075_v39 = vrot.slane %v3073_v28, 4  ;;  %v4456_v28 = vld [vmem:[#allocation2 + $0x40] ss:$8 sps:$4 sm:$0xff]  }
 0x1ca   : > { %4166 = vmatpush3.bf16.msra.mxu1 %v4442_v8  ;;  %4161 = vmatprep.mubr.msk.bf16.mxu1 %vm2023_vm10, %v4444_v48  ;;  %v2617_v8 = vshll.u32 %v2525_v3, 16  ;;  %v3832_v1 = vcombine.low %v2570_v0, %v2584_v24  ;;  %v4448_v48 = vld [vmem:[%s5307_s3 + $0x58] sm:$0xff]   ;;  %v3078_v0 = vrot.slane %v3076_v29, 5  ;;  %v3103_v7 = vrot.slane %v3101_v51, 4 }
 0x1cb   : > { %4167 = vmatprep.subr.bf16.mxu1 %v4445_v42  ;;  %v2806_v30 = vsel %vm5010_vm13, %v3847_v19, %v2805_v20 }
 0x1cc   : > { %v2619_v25 = vrot.slane %v2617_v8, 5  ;;  %v3843_v8 = vrot.slane %v2757_v37, 9  ;;  %v3079_v21 = vor.u32 %v3078_v0, %v3075_v39  ;;  %v3159_v39 = vrot.slane %v3157_v63, 4 }
 0x1ce   : > { %4168 = vmatpush3.bf16.msra.mxu1 %v4445_v42  ;;  %v2620_v42 = vor.u32 %v2619_v25, %v2616_v23  ;;  %v4452_v23 = vld [vmem:[%s5307_s3 + $0x70] sm:$0xff]   ;;  %v2810_v25 = vsel %vm5010_vm13, %v3848_v31, %v2809_v36  ;;  %v3080_v37 = vrot.slane %v3079_v21, 4 }
 0x1cf   : > { %4177 = vmatprep.subr.bf16.mxu1 %v5067_v46  ;;  %v3856_v24 = vcombine.low %v2806_v30, %v2810_v25 }
 0x1d0   : > { %v2621_v45 = vrot.slane %v2620_v42, 4  ;;  %v3062_v42 = vld [vmem:[#allocation2 + $0x28] sm:$0xf] }
 0x1d1   : > { %4162 = vmatmul.mubr.msk.bf16.gmra.mrb[4].mxu1 %vm2023_vm10, %v4446_v9  ;;  %v2789_v9 = vrot.slane %v5071_v56, 5  ;;  %v4450_v56 = vld [vmem:[%s5307_s3 + $0x68] sm:$0xff]   ;;  %v3118_v26 = vshll.u32 %v3062_v42, 16 }
 0x1d2   : > { %4169 = vmatprep.mubr.msk.bf16.mxu1 %vm2023_vm10, %v3831_v2  ;;  %v2626_v3 = vsel %vm4647_vm3, %v2621_v45, %v2625_v17  ;;  %v5153_v45 = vld [vmem:[#allocation2 + $0x1c] sm:$0x1] }
 0x1d3   : > { %v3834_v11 = vcombine.low %v2626_v3, %v2640_v49  ;;  %v2790_v2 = vsel %vm5010_vm13, %v3843_v8, %v2789_v9  ;;  %v4455_v17 = vld [vmem:[%s5307_s3 + $0x78] sm:$0xff]   ;;  %v3146_v3 = vshll.u32 %v3066_v43, 16  ;;  %v3120_v34 = vrot.slane %v3118_v26, 5  ;;  %v5186_v26 = vld [vmem:[#allocation2 + $0x44] sm:$0x1] }
 0x1d4   : > { %v3106_v8 = vrot.slane %v3104_v54, 5  ;;  %v3171_v9 = vshrl.u32 %v3070_v47, 16 }
 0x1d6   : > { %v3107_v20 = vor.u32 %v3106_v8, %v3103_v7  ;;  %v3173_v25 = vrot.slane %v3171_v9, 4  ;;  %v3328_v9 = vrot.slane %v5153_v45, 5 }
 0x1d8   : > { %v3177_v21 = vor.u32 %v3176_v61, %v3173_v25 }
 0x1d9   : > { %4170 = vmatmul.mubr.msk.bf16.vlgmr.msra.gmra.mrb[0].mxu1 %vm2023_vm10, %v3832_v1  ;;  %v3092_v1 = vrot.slane %v3090_v33, 5 }
 0x1da   : > { %4178 = vmatpush3.bf16.msra.mxu1 %v5067_v46  ;;  %4173 = vmatprep.mubr.msk.bf16.mxu1 %vm2023_vm10, %v3833_v16  ;;  %v2758_v46 = vld [vmem:[#allocation2 + $0x20] sm:$0xe]  ;;  %v3115_v16 = vshrl.u32 %v3062_v42, 16 }
 0x1db   : > { %4179 = vmatprep.subr.bf16.mxu1 %v4448_v48  ;;  %v3844_v32 = vrot.slane %v2758_v46, 9  ;;  %v3093_v27 = vor.u32 %v3092_v1, %v3089_v41  ;;  %v3143_v46 = vshrl.u32 %v3066_v43, 16  ;;  %v3108_v41 = vrot.slane %v3107_v20, 4  ;;  %v5188_v43 = vld [vmem:[#allocation2 + $0x4c] sm:$0x1] }
 0x1dc   : > { %v3126_v1 = vrot.slane %v3124_v22, 5  ;;  %v3180_v54 = vshll.u32 %v5188_v43, 16 }
 0x1dd   : > { %v2794_v52 = vsel %vm5010_vm13, %v3844_v32, %v2793_v60  ;;  %v3131_v32 = vrot.slane %v3129_v18, 4  ;;  %v3134_v60 = vrot.slane %v3132_v44, 5  ;;  %v3145_v13 = vrot.slane %v3143_v46, 4 }
 0x1de   : > { %4180 = vmatpush3.bf16.msra.mxu1 %v4448_v48  ;;  %v3854_v15 = vcombine.low %v2790_v2, %v2794_v52  ;;  %v5151_v48 = vld [vmem:[#allocation2 + $0x14] sm:$0x1]  ;;  %v3094_v52 = vrot.slane %v3093_v27, 4  ;;  %v3148_v2 = vrot.slane %v3146_v3, 5  ;;  %v3298_v27 = vld [vmem:[#allocation2 + $0x10] sm:$0xe] }
 0x1df   : > { %4189 = vmatprep.subr.bf16.mxu1 %v4449_v55  ;;  %v3082_v49 = vshll.u32 %v5151_v48, 16  ;;  %v3135_v19 = vor.u32 %v3134_v60, %v3131_v32  ;;  %v3299_v32 = vld [vmem:[#allocation2 + $0x18] sm:$0xe]  ;;  %v3891_v60 = vrot.slane %v3298_v27, 9 }
 0x1e0   : > { %v3149_v62 = vor.u32 %v3148_v2, %v3145_v13  ;;  %v3892_v8 = vrot.slane %v3299_v32, 9  ;;  %v3301_v13 = vld [vmem:[#allocation2 + $0x28] sm:$0xe] }
 0x1e1   : > { %4174 = vmatmul.mubr.msk.bf16.gmra.mrb[4].mxu1 %vm2023_vm10, %v3834_v11  ;;  %v3117_v11 = vrot.slane %v3115_v16, 4  ;;  %v3084_v12 = vrot.slane %v3082_v49, 5  ;;  %v3136_v42 = vrot.slane %v3135_v19, 4  ;;  %v3166_v49 = vshll.u32 %v5186_v26, 16 }
 0x1e2   : > { %4181 = vmatprep.mubr.msk.bf16.mxu1 %vm2023_vm10, %v3853_v59  ;;  %v3096_v59 = vshll.u32 %v5153_v45, 16  ;;  %v3150_v16 = vrot.slane %v3149_v62, 4  ;;  %v3329_v2 = vsel %vm5010_vm13, %v3892_v8, %v3328_v9  ;;  %v3336_v45 = vrot.slane %v5167_v50, 5 }
 0x1e3   : > { %v3121_v58 = vor.u32 %v3120_v34, %v3117_v11  ;;  %v3085_v31 = vsel %vm4647_vm3, %v3080_v37, %v3084_v12  ;;  %v3178_v37 = vrot.slane %v3177_v21, 4  ;;  %v3168_v7 = vrot.slane %v3166_v49, 5 }
 0x1e4   : > { %v3098_v36 = vrot.slane %v3096_v59, 5  ;;  %v3182_v59 = vrot.slane %v3180_v54, 5 }
 0x1e6   : > { %v3099_v29 = vsel %vm4647_vm3, %v3094_v52, %v3098_v36  ;;  %v3183_v12 = vsel %vm4647_vm3, %v3178_v37, %v3182_v59 }
 0x1e7   : > { %v3881_v33 = vcombine.low %v3085_v31, %v3099_v29  ;;  %v3303_v31 = vld [vmem:[#allocation2 + $0x38] sm:$0xe]  ;;  %v3304_v29 = vld [vmem:[#allocation2 + $0x40] sm:$0xe] }
 0x1e8   : > { %v3896_v22 = vrot.slane %v3303_v31, 9 }
 0x1e9   : > { %4182 = vmatmul.mubr.msk.bf16.vlgmr.msra.gmra.mrb[0].mxu1 %vm2023_vm10, %v3854_v15  ;;  %v5169_v15 = vld [vmem:[#allocation2 + $0x24] sm:$0x1] }
 0x1ea   : > { %4190 = vmatpush3.bf16.msra.mxu1 %v4449_v55  ;;  %4185 = vmatprep.mubr.msk.bf16.mxu1 %vm2023_vm10, %v3855_v6  ;;  %v4453_v55 = vld [vmem:[#allocation2 + $0x20] ss:$8 sps:$4 sm:$0xff]   ;;  %v3160_v6 = vshll.u32 %v3068_v4, 16  ;;  %v3110_v30 = vshll.u32 %v5169_v15, 16  ;;  %v3324_v4 = vrot.slane %v5151_v48, 5  ;;  %v3332_v20 = vrot.slane %v5169_v15, 5 }
 0x1eb   : > { %4191 = vmatprep.subr.bf16.mxu1 %v4450_v56  ;;  %v3302_v48 = vld [vmem:[#allocation2 + $0x30] sm:$0xe] }
 0x1ec   : > { %v3162_v0 = vrot.slane %v3160_v6, 5  ;;  %v3112_v18 = vrot.slane %v3110_v30, 5  ;;  %v3325_v52 = vsel %vm5010_vm13, %v3891_v60, %v3324_v4  ;;  %v3894_v6 = vrot.slane %v3301_v13, 9 }
 0x1ed   : > { %v3903_v63 = vcombine.low %v3325_v52, %v3329_v2  ;;  %v3895_v38 = vrot.slane %v3302_v48, 9 }
 0x1ee   : > { %4192 = vmatpush3.bf16.msra.mxu1 %v4450_v56  ;;  %v5171_v56 = vld [vmem:[#allocation2 + $0x34] sm:$0x1]  ;;  %v3163_v51 = vor.u32 %v3162_v0, %v3159_v39  ;;  %v3337_v61 = vsel %vm5010_vm13, %v3894_v6, %v3336_v45 }
 0x1ef   : > { %4201 = vmatprep.subr.bf16.mxu1 %v4452_v23  ;;  %v3340_v36 = vrot.slane %v5171_v56, 5 }
 0x1f0   : > { %v3164_v34 = vrot.slane %v3163_v51, 4 }
 0x1f1   : > { %4186 = vmatmul.mubr.msk.bf16.gmra.mrb[4].mxu1 %vm2023_vm10, %v3856_v24  ;;  %v3138_v24 = vshll.u32 %v5171_v56, 16  ;;  %v3341_v50 = vsel %vm5010_vm13, %v3895_v38, %v3340_v36 }
 0x1f2   : > { %4193 = vmatprep.mubr.msk.bf16.mxu1 %vm2023_vm10, %v4451_v35  ;;  %v3122_v35 = vrot.slane %v3121_v58, 4  ;;  %v3169_v10 = vsel %vm4647_vm3, %v3164_v34, %v3168_v7  ;;  %v3300_v58 = vld [vmem:[#allocation2 + $0x20] sm:$0xe] }
 0x1f3   : > { %v3140_v14 = vrot.slane %v3138_v24, 5  ;;  %v3893_v19 = vrot.slane %v3300_v58, 9 }
 0x1f4   : > { %v3127_v44 = vsel %vm4647_vm3, %v3122_v35, %v3126_v1  ;;  %v3352_v35 = vrot.slane %v5188_v43, 5 }
 0x1f5   : > { %v3141_v47 = vsel %vm4647_vm3, %v3136_v42, %v3140_v14  ;;  %v3333_v56 = vsel %vm5010_vm13, %v3893_v19, %v3332_v20 }
 0x1f6   : > { %v3904_v30 = vcombine.low %v3333_v56, %v3337_v61 }
 0x1f9   : > { %4194 = vmatmul.mubr.msk.bf16.vlgmr.msra.gmra.mrb[0].mxu1 %vm2023_vm10, %v4453_v55 }
 0x1fa   : > { %4202 = vmatpush3.bf16.msra.mxu1 %v4452_v23  ;;  %4197 = vmatprep.mubr.msk.bf16.mxu1 %vm2023_vm10, %v4454_v57  ;;  %v5176_v23 = vld [vmem:[#allocation2 + $0x3c] sm:$0x1]  ;;  %v4458_v57 = vld [vmem:[%s5307_s3 + $0x88] sm:$0xff]  }
 0x1fb   : > { %4203 = vmatprep.subr.bf16.mxu1 %v4455_v17  ;;  %v3152_v40 = vshll.u32 %v5176_v23, 16  ;;  %v3344_v25 = vrot.slane %v5176_v23, 5  ;;  %v3897_v23 = vrot.slane %v3304_v29, 9 }
 0x1fd   : > { %v3154_v55 = vrot.slane %v3152_v40, 5  ;;  %v3345_v15 = vsel %vm5010_vm13, %v3896_v22, %v3344_v25  ;;  %v3913_v40 = vld [vmem:[%s5308_s4] ss:$0 sm:$0xff] }
 0x1fe   : > { %4204 = vmatpush3.bf16.msra.mxu1 %v4455_v17  ;;  %v3113_v17 = vsel %vm4647_vm3, %v3108_v41, %v3112_v18  ;;  %v3905_v62 = vcombine.low %v3341_v50, %v3345_v15 }
 0x1ff   : > { %4213 = vmatprep.subr.bf16.mxu1 %v5165_v5  ;;  %v3882_v46 = vcombine.low %v3113_v17, %v3127_v44  ;;  %v3155_v3 = vsel %vm4647_vm3, %v3150_v16, %v3154_v55 }
 0x200   : > { %v3883_v11 = vcombine.low %v3141_v47, %v3155_v3 }
 0x201   : > { %4198 = vmatmul.mubr.msk.bf16.gmra.mrb[4].mxu1 %vm2023_vm10, %v4456_v28  ;;  %v3305_v28 = vld [vmem:[#allocation2 + $0x48] sm:$0xe] }
 0x202   : > { %4205 = vmatprep.mubr.msk.bf16.mxu1 %vm2023_vm10, %v3881_v33  ;;  %v3898_v24 = vrot.slane %v3305_v28, 9  ;;  %v3348_v33 = vrot.slane %v5186_v26, 5 }
 0x204   : > { %v3349_v39 = vsel %vm5010_vm13, %v3897_v23, %v3348_v33  ;;  %v3353_v0 = vsel %vm5010_vm13, %v3898_v24, %v3352_v35 }
 0x205   : > { %v3906_v42 = vcombine.low %v3349_v39, %v3353_v0 }
 0x209   : > { %4206 = vmatmul.mubr.msk.bf16.vlgmr.msra.gmra.mrb[0].mxu1 %vm2023_vm10, %v3882_v46 }
 0x20a   : > { %4214 = vmatpush3.bf16.msra.mxu1 %v5165_v5  ;;  %4209 = vmatprep.mubr.msk.bf16.mxu1 %vm2023_vm10, %v3883_v11  ;;  %v3884_v5 = vcombine.low %v3169_v10, %v3183_v12 }
 0x20b   : > { %4215 = vmatprep.subr.bf16.mxu1 %v4458_v57 }
 0x20e   : > { %4216 = vmatpush3.bf16.msra.mxu1 %v4458_v57 }
 0x211   : > { %4210 = vmatmul.mubr.msk.bf16.gmra.mrb[4].mxu1 %vm2023_vm10, %v3884_v5 }
 0x212   : > { %4217 = vmatprep.mubr.msk.bf16.mxu1 %vm2023_vm10, %v3903_v63 }
 0x219   : > { %4218 = vmatmul.mubr.msk.bf16.vlgmr.msra.gmra.mrb[0].mxu1 %vm2023_vm10, %v3904_v30 }
 0x21a   : > { %4221 = vmatprep.mubr.msk.bf16.mxu1 %vm2023_vm10, %v3905_v62 }
 0x221   : > { %4222 = vmatmul.mubr.msk.bf16.gmra.mrb[4].mxu1 %vm2023_vm10, %v3906_v42 }
 0x2ec   : > { %v4219_v41 = vpop.f32.mrb[0].mxu1 }
 0x2ed   : > { %v3477_v1 = vadd.f32 %v4219_v41, %v3913_v40  ;;  %v3429_v14 = vpop.f32.mrb[1].mxu1 }
 0x2ee   : > { %v3475_v16 = vadd.f32 %v3913_v40, %v3429_v14  ;;  %v4220_v26 = vpop.f32.mrb[2].mxu1 }
 0x2ef   : > { %v3485_v43 = vmax.f32 %v3477_v1, 0.0  ;;  %v3478_v21 = vadd.f32 %v4220_v26, %v3913_v40  ;;  %v3432_v18 = vpop.f32.mrb[3].mxu1 }
 0x2f0   : > { %v3483_v53 = vmax.f32 %v3475_v16, 0.0  ;;  %v3476_v44 = vadd.f32 %v3913_v40, %v3432_v18 }
 0x2f1   : > { %v3493_v51 = vpack.c.bf16 %v3485_v43, %v3485_v43  ;;  %v3486_v54 = vmax.f32 %v3478_v21, 0.0 }
 0x2f2   : > { %v3491_v47 = vpack.c.bf16 %v3483_v53, %v3483_v53  ;;  %v3484_v55 = vmax.f32 %v3476_v44, 0.0 }
 0x2f3   : > { %3501 = vst.msk [vmem:[%s217_s6 + $0x8] sm:$0xf] %vm1673_vm4, %v3493_v51  ;;  %v3494_v17 = vpack.c.bf16 %v3486_v54, %v3486_v54 }
 0x2f4   : > { %3499 = vst.msk [vmem:[%s217_s6] sm:$0xf] %vm1673_vm4, %v3491_v47  ;;  %v3492_v49 = vpack.c.bf16 %v3484_v55, %v3484_v55  ;;  %v4223_v27 = vpop.f32.mrb[4].mxu1 }
 0x2f5   : > { %3502 = vst.msk [vmem:[%s217_s6 + $0xc] sm:$0xf] %vm1673_vm4, %v3494_v17  ;;  %v3481_v46 = vadd.f32 %v4223_v27, %v3913_v40  ;;  %v3445_v3 = vpop.f32.mrb[5].mxu1 }
 0x2f6   : > { %3500 = vst.msk [vmem:[%s217_s6 + $0x4] sm:$0xf] %vm1673_vm4, %v3492_v49  ;;  %v3479_v57 = vadd.f32 %v3913_v40, %v3445_v3  ;;  %v4224_v11 = vpop.f32.mrb[6].mxu1 }
 0x2f7   : > { %v3489_v34 = vmax.f32 %v3481_v46, 0.0  ;;  %v3482_v37 = vadd.f32 %v4224_v11, %v3913_v40  ;;  %v3448_v59 = vpop.f32.mrb[7].mxu1 }
 0x2f8   : > { %v3487_v32 = vmax.f32 %v3479_v57, 0.0  ;;  %v3480_v60 = vadd.f32 %v3913_v40, %v3448_v59 }
 0x2f9   : > { %v3497_v4 = vpack.c.bf16 %v3489_v34, %v3489_v34  ;;  %v3490_v7 = vmax.f32 %v3482_v37, 0.0 }
 0x2fa   : > { %v3495_v8 = vpack.c.bf16 %v3487_v32, %v3487_v32  ;;  %v3488_v9 = vmax.f32 %v3480_v60, 0.0 }
 0x2fb   : > { %3505 = vst.msk [vmem:[%s217_s6 + $0x18] sm:$0xf] %vm1673_vm4, %v3497_v4  ;;  %v3498_v10 = vpack.c.bf16 %v3490_v7, %v3490_v7 }
 0x2fc   : > { %3503 = vst.msk [vmem:[%s217_s6 + $0x10] sm:$0xf] %vm1673_vm4, %v3495_v8  ;;  %v3496_v12 = vpack.c.bf16 %v3488_v9, %v3488_v9 }
 0x2fd   : > { %3506 = vst.msk [vmem:[%s217_s6 + $0x1c] sm:$0xf] %vm1673_vm4, %v3498_v10 }
 0x2fe   : > { %3504 = vst.msk [vmem:[%s217_s6 + $0x14] sm:$0xf] %vm1673_vm4, %v3496_v12 }
 0x2ff   : > { %4472 = shalt.err (!%p4469_p3)
}
 0x300   : > { %s4473_s16 = scalar_lea.hbm %s5254_s11, 512  ;;  %s4477_s25 = scalar_lea.hbm %s5309_s5, 1024 }
 0x301   : > { %p4474_p4 = scmp.ne.s32.totalorder %s5254_s11, %s4473_s16  ;;  %p4478_p9 = scmp.lt.u32.totalorder %s5254_s11, %s5309_s5 }
 0x302   : > { %p4479_p10 = scmp.lt.u32.totalorder %s4477_s25, %s4473_s16  ;;  %p4481_p12 = scmp.lt.u32.totalorder %s4473_s16, %s5254_s11 }
 0x303   : > { %p4475_p7 = pnand %p4474_p4, %p4595_p5 }
 0x304   : > { %p4480_p11 = por %p4479_p10, %p4478_p9 }
 0x305   : > { %p4476_p8 = pneg %p4475_p7 }
 0x306   : > { %p4482_p13 = por %p4481_p12, %p4480_p11 }
 0x308   : > { %p4483_p0 = pnand %p4482_p13, %p4476_p8 }
 0x30a   : > { %4486 = shalt.err (!%p4483_p0)
}
 0x30b   : > { %s4525_s6 = smov 64   ;;  %s4526_s7 = smov 4  }
 0x30c   : > { %4354 = dma.vmem_to_hbm [thread:$0]  (%p4595_p5), %s5256_s8, 512, %s5254_s11, %s5263_s22, %s4525_s6, %s4525_s6, %s4526_s7  }
 0x30d PF: > { %p4360_p1 = scmp.ge.s32.totalorder %s4521_s21, 2  ;;  %s3536_s9 = sand.u32 1, %s4509_s18  }
 0x30e   : > { %s3537_s10 = scalar_lea.sflag [#allocation4], %s3536_s9 }
 0x30f   : > { %p4357_p2 = pnand %p4360_p1, %p4599_p6 }
 0x311   : > { %4504 = dma.done.wait (!%p4357_p2), %s3537_s10, 512  }
 0x312   : > { %4506 = vsyncadd (!%p4357_p2), %s3537_s10, 4294966784  ;;  %p15_p3 = scmp.ge.s32.totalorder %s4582_s24, 4   ;;  %s5320_s18 = smov %s4513_s19 }
 0x313   : > { %s5321_s19 = smov %s4517_s20  ;;  %s5322_s20 = smov %s4593_s27 }
 0x314   : > { %s5323_s21 = smov %s4582_s24  ;;  %17 = sbr.rel (!%p15_p3) target bundleno = 3 (0x3), region = 98 }
 0x31b   :  { %3542 = vsyncpa [#allocation4], 1 }
 0x31c   :  { %3544 = vsyncpa [#allocation4 + $0x1], 1 }

</bundles_post_ra>
